<compile_context>
chip_gen: v7x
topology: tpu7x:2x2x1
jax: 0.10.0
libtpu: 0.0.40
codegen_flags: <defaults>
</compile_context>

<pallas_src>
import functools
import math

import jax
import jax.numpy as jnp
from jax.experimental import pallas as pl
from jax.experimental.pallas import tpu as pltpu

# Matmul operand dtype: bf16 is MXU-native on v5e/v6e/v7x, halves weight DMA and
# VMEM footprint; accumulation stays float32.  Set to jnp.float32 for exact fp32.
MXU_DTYPE = jnp.bfloat16
# Approximate (EUP-slot) reciprocal in the softmax denominator (~1e-3 rel. err).
APPROX_SOFTMAX_RECIP = True
LN_EPS = 1e-5


def _round_up(x, m):
    return (x + m - 1) // m * m


def _pick_batch_block(batch):
    """Largest divisor of batch that still leaves >= 2 grid steps (v7x megacore)."""
    if batch <= 1:
        return 1
    for bc in range(batch // 2, 0, -1):
        if batch % bc == 0:
            return bc
    return 1


def _recip(x):
    if APPROX_SOFTMAX_RECIP:
        return pl.reciprocal(x, approx=True)
    return 1.0 / x


# ---------------------------------------------------------------------------
# Patch embedding (+ cls token + positional embedding + sequence padding)
# ---------------------------------------------------------------------------
def _embed_kernel(patch_ref, w_ref, tab_ref, o_ref):
    bc, s_pad, d_patch = patch_ref.shape
    e = w_ref.shape[1]
    pf = patch_ref[...].reshape(bc * s_pad, d_patch).astype(MXU_DTYPE)
    emb = jnp.dot(pf, w_ref[...], preferred_element_type=jnp.float32)
    # tab rows: 0 = cls_token + pos[0]; 1..T = in_bias + pos[i]; pad rows = 0.
    # (patch row 0 and pad rows are zero, so their matmul contribution is 0.)
    o_ref[...] = emb.reshape(bc, s_pad, e) + tab_ref[...]


def patch_embed(padded_patches, params):
    """[B, S_pad, D] zero-padded patches -> [B, S_pad, E] token embeddings."""
    b, s_pad, d_patch = padded_patches.shape
    e = params["head_ln_g"].shape[1]
    bc = _pick_batch_block(b)
    return pl.pallas_call(
        _embed_kernel,
        out_shape=jax.ShapeDtypeStruct((b, s_pad, e), jnp.float32),
        grid=(b // bc,),
        in_specs=[
            pl.BlockSpec((bc, s_pad, d_patch), lambda i: (i, 0, 0)),
            pl.BlockSpec((d_patch, e), lambda i: (0, 0)),
            pl.BlockSpec((s_pad, e), lambda i: (0, 0)),
        ],
        out_specs=pl.BlockSpec((bc, s_pad, e), lambda i: (i, 0, 0)),
        compiler_params=pltpu.CompilerParams(dimension_semantics=("parallel",)),
    )(padded_patches, params["in_w"], params["embed_table"])


# ---------------------------------------------------------------------------
# Whole transformer stack in one pallas_call
# ---------------------------------------------------------------------------
def _layers_kernel(x_ref, vec_ref, wqkv_ref, bqkv_ref, wo_ref, w1_ref, b1_ref,
                   w2_ref, o_ref, ctx_ref, *, num_heads, s_valid):
    layer = pl.program_id(1)

    # The activation lives in the revisited output block across the whole layer
    # axis; load it from HBM exactly once per batch chunk.
    @pl.when(layer == 0)
    def _():
        o_ref[...] = x_ref[...]

    bc, s_pad, e = x_ref.shape
    heads = num_heads
    dh = e // heads
    nf = bc * s_pad

    vec = vec_ref[0]                              # [8, E] packed per-layer vectors
    ln1_g, ln1_b, bo = vec[0:1], vec[1:2], vec[2:3]
    ln2_g, ln2_b, b2 = vec[3:4], vec[4:5], vec[5:6]

    x = o_ref[...].reshape(nf, e)                 # fp32 resident activation

    # ---- pre-LN 1 ----
    mu = jnp.mean(x, axis=-1, keepdims=True)
    var = jnp.mean(jnp.square(x - mu), axis=-1, keepdims=True)
    xn = (x - mu) * jax.lax.rsqrt(var + LN_EPS) * ln1_g + ln1_b

    # ---- fused QKV projection (q columns/bias pre-scaled by 1/sqrt(dh)) ----
    qkv = jnp.dot(xn.astype(MXU_DTYPE), wqkv_ref[0],
                  preferred_element_type=jnp.float32) + bqkv_ref[0]
    q, k, v = qkv[:, :e], qkv[:, e:2 * e], qkv[:, 2 * e:]

    key_mask = None
    if s_pad != s_valid:                          # mask padded keys out of softmax
        key_mask = jax.lax.broadcasted_iota(jnp.int32, (1, s_pad), 1) < s_valid

    # ---- per-(batch-chunk element, head) attention; bc*heads static -> unrolled.
    # Head contexts are written into a VMEM scratch at their lane offsets so the
    # output projection becomes one lane-dense [N, E] @ [E, E] matmul.
    for b in range(bc):
        r0 = b * s_pad
        for h in range(heads):
            c0 = h * dh
            qh = q[r0:r0 + s_pad, c0:c0 + dh].astype(MXU_DTYPE)
            kh = k[r0:r0 + s_pad, c0:c0 + dh].astype(MXU_DTYPE)
            vh = v[r0:r0 + s_pad, c0:c0 + dh].astype(MXU_DTYPE)
            s = jax.lax.dot_general(qh, kh, (((1,), (1,)), ((), ())),
                                    preferred_element_type=jnp.float32)  # [S, S]
            if key_mask is not None:
                s = jnp.where(key_mask, s, -1e30)
            m = jnp.max(s, axis=-1, keepdims=True)
            p = jnp.exp(s - m)
            p = p * _recip(jnp.sum(p, axis=-1, keepdims=True))
            ctx_ref[r0:r0 + s_pad, c0:c0 + dh] = jnp.dot(
                p.astype(MXU_DTYPE), vh, preferred_element_type=jnp.float32)

    # ---- fused output projection + residual ----
    x = x + jnp.dot(ctx_ref[...].astype(MXU_DTYPE), wo_ref[0],
                    preferred_element_type=jnp.float32) + bo

    # ---- pre-LN 2 + FFN (exact-erf GELU, matches nn.GELU default) + residual ----
    mu2 = jnp.mean(x, axis=-1, keepdims=True)
    var2 = jnp.mean(jnp.square(x - mu2), axis=-1, keepdims=True)
    xn2 = (x - mu2) * jax.lax.rsqrt(var2 + LN_EPS) * ln2_g + ln2_b
    hmid = jnp.dot(xn2.astype(MXU_DTYPE), w1_ref[0],
                   preferred_element_type=jnp.float32) + b1_ref[0]
    hmid = 0.5 * hmid * (1.0 + jax.lax.erf(hmid * (1.0 / math.sqrt(2.0))))
    x = x + jnp.dot(hmid.astype(MXU_DTYPE), w2_ref[0],
                    preferred_element_type=jnp.float32) + b2

    o_ref[...] = x.reshape(bc, s_pad, e)


def transformer_layers(h, params, *, num_heads, s_valid):
    b, s_pad, e = h.shape
    n_layers = params["w_qkv"].shape[0]
    hd = params["w1"].shape[2]
    bc = _pick_batch_block(b)

    act_spec = pl.BlockSpec((bc, s_pad, e), lambda i, l: (i, 0, 0))

    def layer_spec(*shape):
        return pl.BlockSpec((1,) + shape, lambda i, l: (l, 0, 0))

    return pl.pallas_call(
        functools.partial(_layers_kernel, num_heads=num_heads, s_valid=s_valid),
        out_shape=jax.ShapeDtypeStruct((b, s_pad, e), jnp.float32),
        grid=(b // bc, n_layers),
        in_specs=[
            act_spec,                    # activation (aliased with output)
            layer_spec(8, e),            # packed ln1_g/ln1_b/bo/ln2_g/ln2_b/b2
            layer_spec(e, 3 * e),        # W_qkv (q pre-scaled), bf16
            layer_spec(1, 3 * e),        # b_qkv (q bias pre-scaled)
            layer_spec(e, e),            # W_o, bf16
            layer_spec(e, hd),           # FFN W1, bf16
            layer_spec(1, hd),           # FFN b1
            layer_spec(hd, e),           # FFN W2, bf16
        ],
        out_specs=act_spec,
        scratch_shapes=[pltpu.VMEM((bc * s_pad, e), jnp.float32)],
        input_output_aliases={0: 0},     # update activation in place (input donated)
        compiler_params=pltpu.CompilerParams(
            dimension_semantics=("parallel", "arbitrary"),
            vmem_limit_bytes=48 * 1024 * 1024,
        ),
    )(h, params["vec8"], params["w_qkv"], params["b_qkv"], params["w_o"],
      params["w1"], params["b1"], params["w2"])


# ---------------------------------------------------------------------------
# Classifier head: fused LayerNorm + Linear on the cls token
# ---------------------------------------------------------------------------
def _head_kernel(h_ref, g_ref, b_ref, w_ref, bias_ref, o_ref):
    b, _, e = h_ref.shape
    x = h_ref[:, 0:1, :].reshape(b, e)            # cls tokens
    mu = jnp.mean(x, axis=-1, keepdims=True)
    var = jnp.mean(jnp.square(x - mu), axis=-1, keepdims=True)
    xn = (x - mu) * jax.lax.rsqrt(var + LN_EPS) * g_ref[...] + b_ref[...]
    o_ref[...] = jnp.dot(xn.astype(MXU_DTYPE), w_ref[...],
                         preferred_element_type=jnp.float32) + bias_ref[...]


def mlp_head(h, params):
    b, s_pad, e = h.shape
    n_cls = params["head_w"].shape[1]
    return pl.pallas_call(
        _head_kernel,
        out_shape=jax.ShapeDtypeStruct((b, n_cls), jnp.float32),
        in_specs=[
            pl.BlockSpec((b, s_pad, e), lambda: (0, 0, 0)),
            pl.BlockSpec((1, e), lambda: (0, 0)),
            pl.BlockSpec((1, e), lambda: (0, 0)),
            pl.BlockSpec((e, n_cls), lambda: (0, 0)),
            pl.BlockSpec((1, n_cls), lambda: (0, 0)),
        ],
        out_specs=pl.BlockSpec((b, n_cls), lambda: (0, 0)),
    )(h, params["head_ln_g"], params["head_ln_b"], params["head_w"], params["head_b"])


# ---------------------------------------------------------------------------
# Model glue (layout plumbing in plain JAX)
# ---------------------------------------------------------------------------
def img_to_patch(x, patch_size):
    """x: [B, C, H, W] -> [B, T, C*p*p]  (matches the PyTorch helper)."""
    b, c, hh, ww = x.shape
    p = patch_size
    x = x.reshape(b, c, hh // p, p, ww // p, p)
    x = x.transpose(0, 2, 4, 1, 3, 5)
    return x.reshape(b, (hh // p) * (ww // p), c * p * p)


def vit_forward(params, x, *, patch_size, num_heads):
    patches = img_to_patch(x, patch_size)          # [B, T, C*p*p]
    t = patches.shape[1]
    s_valid = t + 1                                # + cls token
    s_pad = _round_up(s_valid, 8)
    # Row 0 (cls slot) and tail pad rows are zero; the embed kernel's additive
    # table supplies cls+pos0 / in_bias+pos_i / zeros for those rows.
    padded = jnp.pad(patches, ((0, 0), (1, s_pad - s_valid), (0, 0)))
    h = patch_embed(padded, params)                # [B, S_pad, E]
    # dropout(p=0.0) -> identity
    h = transformer_layers(h, params, num_heads=num_heads, s_valid=s_valid)
    return mlp_head(h, params)                     # [B, num_classes]


# ---------------------------------------------------------------------------
# Parameter prep: fold softmax scale into Wq/bq, fuse QKV, pack small vectors,
# stack per-layer weights along L, cast matmul weights to bf16 — all outside
# the kernels (pure layout / constant folding).
# ---------------------------------------------------------------------------
def prepare_params(params, num_heads, *, seq_pad):
    e = params["in_w"].shape[1]
    dh = e // num_heads
    scale = 1.0 / math.sqrt(dh)

    w_qkv, b_qkv, w_o, w1, b1, w2, vec8 = [], [], [], [], [], [], []
    zero_e = jnp.zeros((e,), jnp.float32)
    for p in params["layers"]:
        w_qkv.append(jnp.concatenate([p["wq"] * scale, p["wk"], p["wv"]], axis=1))
        b_qkv.append(jnp.concatenate([p["bq"] * scale, p["bk"], p["bv"]])[None, :])
        w_o.append(p["wo"])
        w1.append(p["w1"])
        b1.append(p["b1"][None, :])
        w2.append(p["w2"])
        vec8.append(jnp.stack([p["ln1_g"], p["ln1_b"], p["bo"],
                               p["ln2_g"], p["ln2_b"], p["b2"], zero_e, zero_e]))

    pos = params["pos_embedding"][0]               # [1+num_patches, E]
    t = pos.shape[0] - 1
    table = jnp.zeros((seq_pad, e), jnp.float32)
    table = table.at[0].set(params["cls_token"][0, 0] + pos[0])
    table = table.at[1:t + 1].set(params["in_b"][None, :] + pos[1:t + 1])

    stk = lambda xs: jnp.stack(xs, axis=0)
    return dict(
        in_w=params["in_w"].astype(MXU_DTYPE),
        embed_table=table,
        vec8=stk(vec8),
        w_qkv=stk(w_qkv).astype(MXU_DTYPE),
        b_qkv=stk(b_qkv),
        w_o=stk(w_o).astype(MXU_DTYPE),
        w1=stk(w1).astype(MXU_DTYPE),
        b1=stk(b1),
        w2=stk(w2).astype(MXU_DTYPE),
        head_ln_g=params["head_ln_g"][None, :],
        head_ln_b=params["head_ln_b"][None, :],
        head_w=params["head_w"].astype(MXU_DTYPE),
        head_b=params["head_b"][None, :],
    )


# ---------------------------------------------------------------------------
# Deterministic synthetic parameters (natural layout)
# ---------------------------------------------------------------------------
def init_vit_params(key, *, embed_dim, hidden_dim, num_channels, num_heads,
                    num_layers, num_classes, patch_size, num_patches):
    def dense(k, fan_in, fan_out):
        kw, kb = jax.random.split(k)
        w = jax.random.normal(kw, (fan_in, fan_out), jnp.float32) * 0.02
        b = jax.random.normal(kb, (fan_out,), jnp.float32) * 0.02
        return w, b

    keys = jax.random.split(key, 4 + num_layers)
    d_patch = num_channels * patch_size ** 2

    in_w, in_b = dense(keys[0], d_patch, embed_dim)
    head_w, head_b = dense(keys[1], embed_dim, num_classes)
    cls_token = jax.random.normal(keys[2], (1, 1, embed_dim), jnp.float32)
    pos_embedding = jax.random.normal(keys[3], (1, 1 + num_patches, embed_dim),
                                      jnp.float32)

    layers = []
    for li in range(num_layers):
        lk = jax.random.split(keys[4 + li], 6)
        wq, bq = dense(lk[0], embed_dim, embed_dim)
        wk, bk = dense(lk[1], embed_dim, embed_dim)
        wv, bv = dense(lk[2], embed_dim, embed_dim)
        wo, bo = dense(lk[3], embed_dim, embed_dim)
        w1, b1 = dense(lk[4], embed_dim, hidden_dim)
        w2, b2 = dense(lk[5], hidden_dim, embed_dim)
        layers.append(dict(
            ln1_g=jnp.ones((embed_dim,), jnp.float32),
            ln1_b=jnp.zeros((embed_dim,), jnp.float32),
            wq=wq, bq=bq, wk=wk, bk=bk, wv=wv, bv=bv, wo=wo, bo=bo,
            ln2_g=jnp.ones((embed_dim,), jnp.float32),
            ln2_b=jnp.zeros((embed_dim,), jnp.float32),
            w1=w1, b1=b1, w2=w2, b2=b2,
        ))

    return dict(
        in_w=in_w, in_b=in_b, cls_token=cls_token, pos_embedding=pos_embedding,
        layers=layers,
        head_ln_g=jnp.ones((embed_dim,), jnp.float32),
        head_ln_b=jnp.zeros((embed_dim,), jnp.float32),
        head_w=head_w, head_b=head_b,
    )


# ---------------------------------------------------------------------------
if __name__ == "__main__":
    B, C, H_img, W_img = 2, 3, 16, 16
    patch_size = 4
    num_patches = (H_img // patch_size) * (W_img // patch_size)   # 16 -> 17 tokens
    embed_dim = 32
    hidden_dim = 64
    num_heads = 4
    num_layers = 2
    num_classes = 10

    root = jax.random.PRNGKey(0)
    kx, kp = jax.random.split(root)
    x = jax.random.normal(kx, (B, C, H_img, W_img), jnp.float32)

    params_nat = init_vit_params(
        kp,
        embed_dim=embed_dim, hidden_dim=hidden_dim, num_channels=C,
        num_heads=num_heads, num_layers=num_layers, num_classes=num_classes,
        patch_size=patch_size, num_patches=num_patches,
    )
    seq_pad = _round_up(num_patches + 1, 8)
    params = prepare_params(params_nat, num_heads, seq_pad=seq_pad)

    fwd = jax.jit(
        functools.partial(vit_forward, patch_size=patch_size, num_heads=num_heads)
    )
    logits = fwd(params, x)
    jax.block_until_ready(logits)

    assert logits.shape == (B, num_classes), logits.shape
    assert bool(jnp.all(jnp.isfinite(logits)))
    print("KERNEL_OK")
</pallas_src>

<mosaic_0001>
module attributes {stable_mosaic.version = 11 : i64} {
  func.func @_embed_kernel(%arg0: i32, %arg1: memref<1x24x48xf32, #tpu.memory_space<vmem>>, %arg2: memref<48x32xbf16, #tpu.memory_space<vmem>>, %arg3: memref<24x32xf32, #tpu.memory_space<vmem>>, %arg4: memref<1x24x32xf32, #tpu.memory_space<vmem>>) attributes {dimension_semantics = [#tpu.dimension_semantics<parallel>], iteration_bounds = array<i64: 2>, scalar_prefetch = 0 : i64, scratch_operands = 0 : i64, tpu.core_type = #tpu.core_type<tc>, window_params = [{transform_indices = @transform_0, window_bounds = array<i64: 1, 24, 48>}, {pipeline_mode = #tpu.pipeline_mode<synchronous>, transform_indices = @transform_1, window_bounds = array<i64: 48, 32>}, {pipeline_mode = #tpu.pipeline_mode<synchronous>, transform_indices = @transform_2, window_bounds = array<i64: 24, 32>}, {transform_indices = @transform_3, window_bounds = array<i64: 1, 24, 32>}]} {
    %c0 = arith.constant 0 : index
    %c0_0 = arith.constant 0 : index
    %c0_1 = arith.constant 0 : index
    %0 = vector.load %arg1[%c0, %c0_0, %c0_1] : memref<1x24x48xf32, #tpu.memory_space<vmem>>, vector<1x24x48xf32>
    %1 = vector.shape_cast %0 : vector<1x24x48xf32> to vector<24x48xf32>
    %2 = arith.truncf %1 : vector<24x48xf32> to vector<24x48xbf16>
    %c0_2 = arith.constant 0 : index
    %c0_3 = arith.constant 0 : index
    %3 = vector.load %arg2[%c0_2, %c0_3] : memref<48x32xbf16, #tpu.memory_space<vmem>>, vector<48x32xbf16>
    %cst = arith.constant dense<0.000000e+00> : vector<24x32xf32>
    %4 = tpu.matmul %2, %3, %cst {dimension_numbers = #tpu.dot_dimension_numbers<[1], [0], [0], [1], [0, 0, 1, 1], [], []>} : vector<24x48xbf16>, vector<48x32xbf16>, vector<24x32xf32> -> vector<24x32xf32>
    %5 = vector.shape_cast %4 : vector<24x32xf32> to vector<1x24x32xf32>
    %c0_4 = arith.constant 0 : index
    %c0_5 = arith.constant 0 : index
    %6 = vector.load %arg3[%c0_4, %c0_5] : memref<24x32xf32, #tpu.memory_space<vmem>>, vector<24x32xf32>
    %7 = vector.shape_cast %6 : vector<24x32xf32> to vector<1x24x32xf32>
    %8 = arith.addf %5, %7 : vector<1x24x32xf32>
    %c0_6 = arith.constant 0 : index
    %c0_7 = arith.constant 0 : index
    %c0_8 = arith.constant 0 : index
    %9 = vector.load %arg4[%c0_6, %c0_7, %c0_8] : memref<1x24x32xf32, #tpu.memory_space<vmem>>, vector<1x24x32xf32>
    tpu.vector_store %arg4[%c0_6, %c0_7, %c0_8], %8 {strides = array<i32>} : memref<1x24x32xf32, #tpu.memory_space<vmem>>, vector<1x24x32xf32>,
    return
  }
  func.func @transform_0(%arg0: i32) -> (i32, i32, i32) {
    %c0_i32 = arith.constant 0 : i32
    %c0_i32_0 = arith.constant 0 : i32
    %c0_i32_1 = arith.constant 0 : i32
    return %arg0, %c0_i32, %c0_i32_0 : i32, i32, i32
  }
  func.func @transform_1(%arg0: i32) -> (i32, i32) {
    %c0_i32 = arith.constant 0 : i32
    %c0_i32_0 = arith.constant 0 : i32
    %c0_i32_1 = arith.constant 0 : i32
    return %c0_i32, %c0_i32_0 : i32, i32
  }
  func.func @transform_2(%arg0: i32) -> (i32, i32) {
    %c0_i32 = arith.constant 0 : i32
    %c0_i32_0 = arith.constant 0 : i32
    %c0_i32_1 = arith.constant 0 : i32
    return %c0_i32, %c0_i32_0 : i32, i32
  }
  func.func @transform_3(%arg0: i32) -> (i32, i32, i32) {
    %c0_i32 = arith.constant 0 : i32
    %c0_i32_0 = arith.constant 0 : i32
    %c0_i32_1 = arith.constant 0 : i32
    return %arg0, %c0_i32, %c0_i32_0 : i32, i32, i32
  }
}

module attributes {stable_mosaic.version = 11 : i64} {
  func.func @_layers_kernel(%arg0: i32, %arg1: i32, %arg2: memref<1x24x32xf32, #tpu.memory_space<vmem>>, %arg3: memref<1x8x32xf32, #tpu.memory_space<vmem>>, %arg4: memref<1x32x96xbf16, #tpu.memory_space<vmem>>, %arg5: memref<1x1x96xf32, #tpu.memory_space<vmem>>, %arg6: memref<1x32x32xbf16, #tpu.memory_space<vmem>>, %arg7: memref<1x32x64xbf16, #tpu.memory_space<vmem>>, %arg8: memref<1x1x64xf32, #tpu.memory_space<vmem>>, %arg9: memref<1x64x32xbf16, #tpu.memory_space<vmem>>, %arg10: memref<1x24x32xf32, #tpu.memory_space<vmem>>, %arg11: memref<24x32xf32, #tpu.memory_space<vmem>>) attributes {dimension_semantics = [#tpu.dimension_semantics<parallel>, #tpu.dimension_semantics<arbitrary>], iteration_bounds = array<i64: 2, 2>, scalar_prefetch = 0 : i64, scratch_operands = 1 : i64, tpu.core_type = #tpu.core_type<tc>, window_params = [{transform_indices = @transform_0, window_bounds = array<i64: 1, 24, 32>}, {transform_indices = @transform_1, window_bounds = array<i64: 1, 8, 32>}, {transform_indices = @transform_2, window_bounds = array<i64: 1, 32, 96>}, {transform_indices = @transform_3, window_bounds = array<i64: 1, 1, 96>}, {transform_indices = @transform_4, window_bounds = array<i64: 1, 32, 32>}, {transform_indices = @transform_5, window_bounds = array<i64: 1, 32, 64>}, {transform_indices = @transform_6, window_bounds = array<i64: 1, 1, 64>}, {transform_indices = @transform_7, window_bounds = array<i64: 1, 64, 32>}, {transform_indices = @transform_8, window_bounds = array<i64: 1, 24, 32>}]} {
    %c0_i32 = arith.constant 0 : i32
    %0 = arith.cmpi eq, %arg1, %c0_i32 : i32
    %1 = arith.extui %0 : i1 to i32
    %c0_i32_0 = arith.constant 0 : i32
    %2 = arith.cmpi ne, %1, %c0_i32_0 : i32
    scf.if %2 {
      %c0_70 = arith.constant 0 : index
      %c0_71 = arith.constant 0 : index
      %c0_72 = arith.constant 0 : index
      %200 = vector.load %arg2[%c0_70, %c0_71, %c0_72] : memref<1x24x32xf32, #tpu.memory_space<vmem>>, vector<1x24x32xf32>
      %c0_73 = arith.constant 0 : index
      %c0_74 = arith.constant 0 : index
      %c0_75 = arith.constant 0 : index
      %201 = vector.load %arg10[%c0_73, %c0_74, %c0_75] : memref<1x24x32xf32, #tpu.memory_space<vmem>>, vector<1x24x32xf32>
      tpu.vector_store %arg10[%c0_73, %c0_74, %c0_75], %200 {strides = array<i32>} : memref<1x24x32xf32, #tpu.memory_space<vmem>>, vector<1x24x32xf32>,
    } else {
    }
    %c0 = arith.constant 0 : index
    %c0_1 = arith.constant 0 : index
    %c0_2 = arith.constant 0 : index
    %3 = vector.load %arg3[%c0, %c0_1, %c0_2] : memref<1x8x32xf32, #tpu.memory_space<vmem>>, vector<1x8x32xf32>
    %4 = vector.shape_cast %3 : vector<1x8x32xf32> to vector<8x32xf32>
    %5 = vector.extract_strided_slice %4 {offsets = [0, 0], sizes = [1, 32], strides = [1, 1]} : vector<8x32xf32> to vector<1x32xf32>
    %6 = vector.extract_strided_slice %4 {offsets = [1, 0], sizes = [1, 32], strides = [1, 1]} : vector<8x32xf32> to vector<1x32xf32>
    %7 = vector.extract_strided_slice %4 {offsets = [2, 0], sizes = [1, 32], strides = [1, 1]} : vector<8x32xf32> to vector<1x32xf32>
    %8 = vector.extract_strided_slice %4 {offsets = [3, 0], sizes = [1, 32], strides = [1, 1]} : vector<8x32xf32> to vector<1x32xf32>
    %9 = vector.extract_strided_slice %4 {offsets = [4, 0], sizes = [1, 32], strides = [1, 1]} : vector<8x32xf32> to vector<1x32xf32>
    %10 = vector.extract_strided_slice %4 {offsets = [5, 0], sizes = [1, 32], strides = [1, 1]} : vector<8x32xf32> to vector<1x32xf32>
    %c0_3 = arith.constant 0 : index
    %c0_4 = arith.constant 0 : index
    %c0_5 = arith.constant 0 : index
    %11 = vector.load %arg10[%c0_3, %c0_4, %c0_5] : memref<1x24x32xf32, #tpu.memory_space<vmem>>, vector<1x24x32xf32>
    %12 = vector.shape_cast %11 : vector<1x24x32xf32> to vector<24x32xf32>
    %cst = arith.constant dense<0.000000e+00> : vector<24xf32>
    %13 = vector.multi_reduction <add>, %12, %cst [1] : vector<24x32xf32> to vector<24xf32>
    %14 = vector.shape_cast %13 : vector<24xf32> to vector<24x1xf32>
    %cst_6 = arith.constant 3.200000e+01 : f32
    %15 = vector.broadcast %cst_6 : f32 to vector<24x1xf32>
    %16 = arith.divf %14, %15 : vector<24x1xf32>
    %17 = vector.broadcast %16 : vector<24x1xf32> to vector<24x32xf32>
    %18 = arith.subf %12, %17 : vector<24x32xf32>
    %19 = arith.mulf %18, %18 : vector<24x32xf32>
    %cst_7 = arith.constant dense<0.000000e+00> : vector<24xf32>
    %20 = vector.multi_reduction <add>, %19, %cst_7 [1] : vector<24x32xf32> to vector<24xf32>
    %21 = vector.shape_cast %20 : vector<24xf32> to vector<24x1xf32>
    %cst_8 = arith.constant 3.200000e+01 : f32
    %22 = vector.broadcast %cst_8 : f32 to vector<24x1xf32>
    %23 = arith.divf %21, %22 : vector<24x1xf32>
    %24 = vector.broadcast %16 : vector<24x1xf32> to vector<24x32xf32>
    %25 = arith.subf %12, %24 : vector<24x32xf32>
    %cst_9 = arith.constant 9.99999974E-6 : f32
    %26 = vector.broadcast %cst_9 : f32 to vector<24x1xf32>
    %27 = arith.addf %23, %26 : vector<24x1xf32>
    %28 = math.rsqrt %27 : vector<24x1xf32>
    %29 = vector.broadcast %28 : vector<24x1xf32> to vector<24x32xf32>
    %30 = arith.mulf %25, %29 : vector<24x32xf32>
    %31 = vector.broadcast %5 : vector<1x32xf32> to vector<24x32xf32>
    %32 = arith.mulf %30, %31 : vector<24x32xf32>
    %33 = vector.broadcast %6 : vector<1x32xf32> to vector<24x32xf32>
    %34 = arith.addf %32, %33 : vector<24x32xf32>
    %35 = arith.truncf %34 : vector<24x32xf32> to vector<24x32xbf16>
    %c0_10 = arith.constant 0 : index
    %c0_11 = arith.constant 0 : index
    %c0_12 = arith.constant 0 : index
    %36 = vector.load %arg4[%c0_10, %c0_11, %c0_12] : memref<1x32x96xbf16, #tpu.memory_space<vmem>>, vector<1x32x96xbf16>
    %37 = vector.shape_cast %36 : vector<1x32x96xbf16> to vector<32x96xbf16>
    %cst_13 = arith.constant dense<0.000000e+00> : vector<24x96xf32>
    %38 = tpu.matmul %35, %37, %cst_13 {dimension_numbers = #tpu.dot_dimension_numbers<[1], [0], [0], [1], [0, 0, 1, 1], [], []>} : vector<24x32xbf16>, vector<32x96xbf16>, vector<24x96xf32> -> vector<24x96xf32>
    %c0_14 = arith.constant 0 : index
    %c0_15 = arith.constant 0 : index
    %c0_16 = arith.constant 0 : index
    %39 = vector.load %arg5[%c0_14, %c0_15, %c0_16] : memref<1x1x96xf32, #tpu.memory_space<vmem>>, vector<1x1x96xf32>
    %40 = vector.shape_cast %39 : vector<1x1x96xf32> to vector<1x96xf32>
    %41 = vector.broadcast %40 : vector<1x96xf32> to vector<24x96xf32>
    %42 = arith.addf %38, %41 : vector<24x96xf32>
    %43 = vector.extract_strided_slice %42 {offsets = [0, 0], sizes = [24, 32], strides = [1, 1]} : vector<24x96xf32> to vector<24x32xf32>
    %44 = vector.extract_strided_slice %42 {offsets = [0, 32], sizes = [24, 32], strides = [1, 1]} : vector<24x96xf32> to vector<24x32xf32>
    %45 = vector.extract_strided_slice %42 {offsets = [0, 64], sizes = [24, 32], strides = [1, 1]} : vector<24x96xf32> to vector<24x32xf32>
    %46 = tpu.iota {dimensions = array<i32: 1>} : vector<1x24xi32>
    %c17_i32 = arith.constant 17 : i32
    %47 = vector.broadcast %c17_i32 : i32 to vector<1x24xi32>
    %48 = arith.cmpi slt, %46, %47 : vector<1x24xi32>
    %49 = vector.extract_strided_slice %43 {offsets = [0, 0], sizes = [24, 8], strides = [1, 1]} : vector<24x32xf32> to vector<24x8xf32>
    %50 = arith.truncf %49 : vector<24x8xf32> to vector<24x8xbf16>
    %51 = vector.extract_strided_slice %44 {offsets = [0, 0], sizes = [24, 8], strides = [1, 1]} : vector<24x32xf32> to vector<24x8xf32>
    %52 = arith.truncf %51 : vector<24x8xf32> to vector<24x8xbf16>
    %53 = vector.extract_strided_slice %45 {offsets = [0, 0], sizes = [24, 8], strides = [1, 1]} : vector<24x32xf32> to vector<24x8xf32>
    %54 = arith.truncf %53 : vector<24x8xf32> to vector<24x8xbf16>
    %cst_17 = arith.constant dense<0.000000e+00> : vector<24x24xf32>
    %55 = tpu.matmul %50, %52, %cst_17 {dimension_numbers = #tpu.dot_dimension_numbers<[1], [1], [0], [0], [0, 0, 1, 0], [], []>} : vector<24x8xbf16>, vector<24x8xbf16>, vector<24x24xf32> -> vector<24x24xf32>
    %cst_18 = arith.constant -1.000000e+30 : f32
    %56 = vector.shape_cast %48 : vector<1x24xi1> to vector<1x24xi1>
    %57 = vector.broadcast %56 : vector<1x24xi1> to vector<24x24xi1>
    %58 = vector.broadcast %cst_18 : f32 to vector<24x24xf32>
    %59 = arith.select %57, %55, %58 : vector<24x24xi1>, vector<24x24xf32>
    %cst_19 = arith.constant dense<0xFF800000> : vector<24xf32>
    %60 = vector.multi_reduction <maximumf>, %59, %cst_19 [1] : vector<24x24xf32> to vector<24xf32>
    %61 = vector.shape_cast %60 : vector<24xf32> to vector<24x1xf32>
    %62 = vector.broadcast %61 : vector<24x1xf32> to vector<24x24xf32>
    %63 = arith.subf %59, %62 : vector<24x24xf32>
    %64 = math.exp %63 : vector<24x24xf32>
    %cst_20 = arith.constant dense<0.000000e+00> : vector<24xf32>
    %65 = vector.multi_reduction <add>, %64, %cst_20 [1] : vector<24x24xf32> to vector<24xf32>
    %66 = vector.shape_cast %65 : vector<24xf32> to vector<24x1xf32>
    %67 = tpu.reciprocal %66 {approx = true} : vector<24x1xf32> -> vector<24x1xf32>
    %68 = vector.broadcast %67 : vector<24x1xf32> to vector<24x24xf32>
    %69 = arith.mulf %64, %68 : vector<24x24xf32>
    %70 = arith.truncf %69 : vector<24x24xf32> to vector<24x24xbf16>
    %cst_21 = arith.constant dense<0.000000e+00> : vector<24x8xf32>
    %71 = tpu.matmul %70, %54, %cst_21 {dimension_numbers = #tpu.dot_dimension_numbers<[1], [0], [0], [1], [0, 0, 1, 1], [], []>} : vector<24x24xbf16>, vector<24x8xbf16>, vector<24x8xf32> -> vector<24x8xf32>
    %c0_22 = arith.constant 0 : index
    %c0_23 = arith.constant 0 : index
    %72 = vector.load %arg11[%c0_22, %c0_23] : memref<24x32xf32, #tpu.memory_space<vmem>>, vector<24x8xf32>
    tpu.vector_store %arg11[%c0_22, %c0_23], %71 {strides = array<i32>} : memref<24x32xf32, #tpu.memory_space<vmem>>, vector<24x8xf32>,
    %73 = vector.extract_strided_slice %43 {offsets = [0, 8], sizes = [24, 8], strides = [1, 1]} : vector<24x32xf32> to vector<24x8xf32>
    %74 = arith.truncf %73 : vector<24x8xf32> to vector<24x8xbf16>
    %75 = vector.extract_strided_slice %44 {offsets = [0, 8], sizes = [24, 8], strides = [1, 1]} : vector<24x32xf32> to vector<24x8xf32>
    %76 = arith.truncf %75 : vector<24x8xf32> to vector<24x8xbf16>
    %77 = vector.extract_strided_slice %45 {offsets = [0, 8], sizes = [24, 8], strides = [1, 1]} : vector<24x32xf32> to vector<24x8xf32>
    %78 = arith.truncf %77 : vector<24x8xf32> to vector<24x8xbf16>
    %cst_24 = arith.constant dense<0.000000e+00> : vector<24x24xf32>
    %79 = tpu.matmul %74, %76, %cst_24 {dimension_numbers = #tpu.dot_dimension_numbers<[1], [1], [0], [0], [0, 0, 1, 0], [], []>} : vector<24x8xbf16>, vector<24x8xbf16>, vector<24x24xf32> -> vector<24x24xf32>
    %cst_25 = arith.constant -1.000000e+30 : f32
    %80 = vector.shape_cast %48 : vector<1x24xi1> to vector<1x24xi1>
    %81 = vector.broadcast %80 : vector<1x24xi1> to vector<24x24xi1>
    %82 = vector.broadcast %cst_25 : f32 to vector<24x24xf32>
    %83 = arith.select %81, %79, %82 : vector<24x24xi1>, vector<24x24xf32>
    %cst_26 = arith.constant dense<0xFF800000> : vector<24xf32>
    %84 = vector.multi_reduction <maximumf>, %83, %cst_26 [1] : vector<24x24xf32> to vector<24xf32>
    %85 = vector.shape_cast %84 : vector<24xf32> to vector<24x1xf32>
    %86 = vector.broadcast %85 : vector<24x1xf32> to vector<24x24xf32>
    %87 = arith.subf %83, %86 : vector<24x24xf32>
    %88 = math.exp %87 : vector<24x24xf32>
    %cst_27 = arith.constant dense<0.000000e+00> : vector<24xf32>
    %89 = vector.multi_reduction <add>, %88, %cst_27 [1] : vector<24x24xf32> to vector<24xf32>
    %90 = vector.shape_cast %89 : vector<24xf32> to vector<24x1xf32>
    %91 = tpu.reciprocal %90 {approx = true} : vector<24x1xf32> -> vector<24x1xf32>
    %92 = vector.broadcast %91 : vector<24x1xf32> to vector<24x24xf32>
    %93 = arith.mulf %88, %92 : vector<24x24xf32>
    %94 = arith.truncf %93 : vector<24x24xf32> to vector<24x24xbf16>
    %cst_28 = arith.constant dense<0.000000e+00> : vector<24x8xf32>
    %95 = tpu.matmul %94, %78, %cst_28 {dimension_numbers = #tpu.dot_dimension_numbers<[1], [0], [0], [1], [0, 0, 1, 1], [], []>} : vector<24x24xbf16>, vector<24x8xbf16>, vector<24x8xf32> -> vector<24x8xf32>
    %c0_29 = arith.constant 0 : index
    %c8 = arith.constant 8 : index
    %96 = vector.load %arg11[%c0_29, %c8] : memref<24x32xf32, #tpu.memory_space<vmem>>, vector<24x8xf32>
    tpu.vector_store %arg11[%c0_29, %c8], %95 {strides = array<i32>} : memref<24x32xf32, #tpu.memory_space<vmem>>, vector<24x8xf32>,
    %97 = vector.extract_strided_slice %43 {offsets = [0, 16], sizes = [24, 8], strides = [1, 1]} : vector<24x32xf32> to vector<24x8xf32>
    %98 = arith.truncf %97 : vector<24x8xf32> to vector<24x8xbf16>
    %99 = vector.extract_strided_slice %44 {offsets = [0, 16], sizes = [24, 8], strides = [1, 1]} : vector<24x32xf32> to vector<24x8xf32>
    %100 = arith.truncf %99 : vector<24x8xf32> to vector<24x8xbf16>
    %101 = vector.extract_strided_slice %45 {offsets = [0, 16], sizes = [24, 8], strides = [1, 1]} : vector<24x32xf32> to vector<24x8xf32>
    %102 = arith.truncf %101 : vector<24x8xf32> to vector<24x8xbf16>
    %cst_30 = arith.constant dense<0.000000e+00> : vector<24x24xf32>
    %103 = tpu.matmul %98, %100, %cst_30 {dimension_numbers = #tpu.dot_dimension_numbers<[1], [1], [0], [0], [0, 0, 1, 0], [], []>} : vector<24x8xbf16>, vector<24x8xbf16>, vector<24x24xf32> -> vector<24x24xf32>
    %cst_31 = arith.constant -1.000000e+30 : f32
    %104 = vector.shape_cast %48 : vector<1x24xi1> to vector<1x24xi1>
    %105 = vector.broadcast %104 : vector<1x24xi1> to vector<24x24xi1>
    %106 = vector.broadcast %cst_31 : f32 to vector<24x24xf32>
    %107 = arith.select %105, %103, %106 : vector<24x24xi1>, vector<24x24xf32>
    %cst_32 = arith.constant dense<0xFF800000> : vector<24xf32>
    %108 = vector.multi_reduction <maximumf>, %107, %cst_32 [1] : vector<24x24xf32> to vector<24xf32>
    %109 = vector.shape_cast %108 : vector<24xf32> to vector<24x1xf32>
    %110 = vector.broadcast %109 : vector<24x1xf32> to vector<24x24xf32>
    %111 = arith.subf %107, %110 : vector<24x24xf32>
    %112 = math.exp %111 : vector<24x24xf32>
    %cst_33 = arith.constant dense<0.000000e+00> : vector<24xf32>
    %113 = vector.multi_reduction <add>, %112, %cst_33 [1] : vector<24x24xf32> to vector<24xf32>
    %114 = vector.shape_cast %113 : vector<24xf32> to vector<24x1xf32>
    %115 = tpu.reciprocal %114 {approx = true} : vector<24x1xf32> -> vector<24x1xf32>
    %116 = vector.broadcast %115 : vector<24x1xf32> to vector<24x24xf32>
    %117 = arith.mulf %112, %116 : vector<24x24xf32>
    %118 = arith.truncf %117 : vector<24x24xf32> to vector<24x24xbf16>
    %cst_34 = arith.constant dense<0.000000e+00> : vector<24x8xf32>
    %119 = tpu.matmul %118, %102, %cst_34 {dimension_numbers = #tpu.dot_dimension_numbers<[1], [0], [0], [1], [0, 0, 1, 1], [], []>} : vector<24x24xbf16>, vector<24x8xbf16>, vector<24x8xf32> -> vector<24x8xf32>
    %c0_35 = arith.constant 0 : index
    %c16 = arith.constant 16 : index
    %120 = vector.load %arg11[%c0_35, %c16] : memref<24x32xf32, #tpu.memory_space<vmem>>, vector<24x8xf32>
    tpu.vector_store %arg11[%c0_35, %c16], %119 {strides = array<i32>} : memref<24x32xf32, #tpu.memory_space<vmem>>, vector<24x8xf32>,
    %121 = vector.extract_strided_slice %43 {offsets = [0, 24], sizes = [24, 8], strides = [1, 1]} : vector<24x32xf32> to vector<24x8xf32>
    %122 = arith.truncf %121 : vector<24x8xf32> to vector<24x8xbf16>
    %123 = vector.extract_strided_slice %44 {offsets = [0, 24], sizes = [24, 8], strides = [1, 1]} : vector<24x32xf32> to vector<24x8xf32>
    %124 = arith.truncf %123 : vector<24x8xf32> to vector<24x8xbf16>
    %125 = vector.extract_strided_slice %45 {offsets = [0, 24], sizes = [24, 8], strides = [1, 1]} : vector<24x32xf32> to vector<24x8xf32>
    %126 = arith.truncf %125 : vector<24x8xf32> to vector<24x8xbf16>
    %cst_36 = arith.constant dense<0.000000e+00> : vector<24x24xf32>
    %127 = tpu.matmul %122, %124, %cst_36 {dimension_numbers = #tpu.dot_dimension_numbers<[1], [1], [0], [0], [0, 0, 1, 0], [], []>} : vector<24x8xbf16>, vector<24x8xbf16>, vector<24x24xf32> -> vector<24x24xf32>
    %cst_37 = arith.constant -1.000000e+30 : f32
    %128 = vector.shape_cast %48 : vector<1x24xi1> to vector<1x24xi1>
    %129 = vector.broadcast %128 : vector<1x24xi1> to vector<24x24xi1>
    %130 = vector.broadcast %cst_37 : f32 to vector<24x24xf32>
    %131 = arith.select %129, %127, %130 : vector<24x24xi1>, vector<24x24xf32>
    %cst_38 = arith.constant dense<0xFF800000> : vector<24xf32>
    %132 = vector.multi_reduction <maximumf>, %131, %cst_38 [1] : vector<24x24xf32> to vector<24xf32>
    %133 = vector.shape_cast %132 : vector<24xf32> to vector<24x1xf32>
    %134 = vector.broadcast %133 : vector<24x1xf32> to vector<24x24xf32>
    %135 = arith.subf %131, %134 : vector<24x24xf32>
    %136 = math.exp %135 : vector<24x24xf32>
    %cst_39 = arith.constant dense<0.000000e+00> : vector<24xf32>
    %137 = vector.multi_reduction <add>, %136, %cst_39 [1] : vector<24x24xf32> to vector<24xf32>
    %138 = vector.shape_cast %137 : vector<24xf32> to vector<24x1xf32>
    %139 = tpu.reciprocal %138 {approx = true} : vector<24x1xf32> -> vector<24x1xf32>
    %140 = vector.broadcast %139 : vector<24x1xf32> to vector<24x24xf32>
    %141 = arith.mulf %136, %140 : vector<24x24xf32>
    %142 = arith.truncf %141 : vector<24x24xf32> to vector<24x24xbf16>
    %cst_40 = arith.constant dense<0.000000e+00> : vector<24x8xf32>
    %143 = tpu.matmul %142, %126, %cst_40 {dimension_numbers = #tpu.dot_dimension_numbers<[1], [0], [0], [1], [0, 0, 1, 1], [], []>} : vector<24x24xbf16>, vector<24x8xbf16>, vector<24x8xf32> -> vector<24x8xf32>
    %c0_41 = arith.constant 0 : index
    %c24 = arith.constant 24 : index
    %144 = vector.load %arg11[%c0_41, %c24] : memref<24x32xf32, #tpu.memory_space<vmem>>, vector<24x8xf32>
    tpu.vector_store %arg11[%c0_41, %c24], %143 {strides = array<i32>} : memref<24x32xf32, #tpu.memory_space<vmem>>, vector<24x8xf32>,
    %c0_42 = arith.constant 0 : index
    %c0_43 = arith.constant 0 : index
    %145 = vector.load %arg11[%c0_42, %c0_43] : memref<24x32xf32, #tpu.memory_space<vmem>>, vector<24x32xf32>
    %146 = arith.truncf %145 : vector<24x32xf32> to vector<24x32xbf16>
    %c0_44 = arith.constant 0 : index
    %c0_45 = arith.constant 0 : index
    %c0_46 = arith.constant 0 : index
    %147 = vector.load %arg6[%c0_44, %c0_45, %c0_46] : memref<1x32x32xbf16, #tpu.memory_space<vmem>>, vector<1x32x32xbf16>
    %148 = vector.shape_cast %147 : vector<1x32x32xbf16> to vector<32x32xbf16>
    %cst_47 = arith.constant dense<0.000000e+00> : vector<24x32xf32>
    %149 = tpu.matmul %146, %148, %cst_47 {dimension_numbers = #tpu.dot_dimension_numbers<[1], [0], [0], [1], [0, 0, 1, 1], [], []>} : vector<24x32xbf16>, vector<32x32xbf16>, vector<24x32xf32> -> vector<24x32xf32>
    %150 = arith.addf %12, %149 : vector<24x32xf32>
    %151 = vector.broadcast %7 : vector<1x32xf32> to vector<24x32xf32>
    %152 = arith.addf %150, %151 : vector<24x32xf32>
    %cst_48 = arith.constant dense<0.000000e+00> : vector<24xf32>
    %153 = vector.multi_reduction <add>, %152, %cst_48 [1] : vector<24x32xf32> to vector<24xf32>
    %154 = vector.shape_cast %153 : vector<24xf32> to vector<24x1xf32>
    %cst_49 = arith.constant 3.200000e+01 : f32
    %155 = vector.broadcast %cst_49 : f32 to vector<24x1xf32>
    %156 = arith.divf %154, %155 : vector<24x1xf32>
    %157 = vector.broadcast %156 : vector<24x1xf32> to vector<24x32xf32>
    %158 = arith.subf %152, %157 : vector<24x32xf32>
    %159 = arith.mulf %158, %158 : vector<24x32xf32>
    %cst_50 = arith.constant dense<0.000000e+00> : vector<24xf32>
    %160 = vector.multi_reduction <add>, %159, %cst_50 [1] : vector<24x32xf32> to vector<24xf32>
    %161 = vector.shape_cast %160 : vector<24xf32> to vector<24x1xf32>
    %cst_51 = arith.constant 3.200000e+01 : f32
    %162 = vector.broadcast %cst_51 : f32 to vector<24x1xf32>
    %163 = arith.divf %161, %162 : vector<24x1xf32>
    %164 = vector.broadcast %156 : vector<24x1xf32> to vector<24x32xf32>
    %165 = arith.subf %152, %164 : vector<24x32xf32>
    %cst_52 = arith.constant 9.99999974E-6 : f32
    %166 = vector.broadcast %cst_52 : f32 to vector<24x1xf32>
    %167 = arith.addf %163, %166 : vector<24x1xf32>
    %168 = math.rsqrt %167 : vector<24x1xf32>
    %169 = vector.broadcast %168 : vector<24x1xf32> to vector<24x32xf32>
    %170 = arith.mulf %165, %169 : vector<24x32xf32>
    %171 = vector.broadcast %8 : vector<1x32xf32> to vector<24x32xf32>
    %172 = arith.mulf %170, %171 : vector<24x32xf32>
    %173 = vector.broadcast %9 : vector<1x32xf32> to vector<24x32xf32>
    %174 = arith.addf %172, %173 : vector<24x32xf32>
    %175 = arith.truncf %174 : vector<24x32xf32> to vector<24x32xbf16>
    %c0_53 = arith.constant 0 : index
    %c0_54 = arith.constant 0 : index
    %c0_55 = arith.constant 0 : index
    %176 = vector.load %arg7[%c0_53, %c0_54, %c0_55] : memref<1x32x64xbf16, #tpu.memory_space<vmem>>, vector<1x32x64xbf16>
    %177 = vector.shape_cast %176 : vector<1x32x64xbf16> to vector<32x64xbf16>
    %cst_56 = arith.constant dense<0.000000e+00> : vector<24x64xf32>
    %178 = tpu.matmul %175, %177, %cst_56 {dimension_numbers = #tpu.dot_dimension_numbers<[1], [0], [0], [1], [0, 0, 1, 1], [], []>} : vector<24x32xbf16>, vector<32x64xbf16>, vector<24x64xf32> -> vector<24x64xf32>
    %c0_57 = arith.constant 0 : index
    %c0_58 = arith.constant 0 : index
    %c0_59 = arith.constant 0 : index
    %179 = vector.load %arg8[%c0_57, %c0_58, %c0_59] : memref<1x1x64xf32, #tpu.memory_space<vmem>>, vector<1x1x64xf32>
    %180 = vector.shape_cast %179 : vector<1x1x64xf32> to vector<1x64xf32>
    %181 = vector.broadcast %180 : vector<1x64xf32> to vector<24x64xf32>
    %182 = arith.addf %178, %181 : vector<24x64xf32>
    %cst_60 = arith.constant 5.000000e-01 : f32
    %183 = vector.broadcast %cst_60 : f32 to vector<24x64xf32>
    %184 = arith.mulf %183, %182 : vector<24x64xf32>
    %cst_61 = arith.constant 0.707106769 : f32
    %185 = vector.broadcast %cst_61 : f32 to vector<24x64xf32>
    %186 = arith.mulf %182, %185 : vector<24x64xf32>
    %187 = math.erf %186 : vector<24x64xf32>
    %cst_62 = arith.constant 1.000000e+00 : f32
    %188 = vector.broadcast %cst_62 : f32 to vector<24x64xf32>
    %189 = arith.addf %188, %187 : vector<24x64xf32>
    %190 = arith.mulf %184, %189 : vector<24x64xf32>
    %191 = arith.truncf %190 : vector<24x64xf32> to vector<24x64xbf16>
    %c0_63 = arith.constant 0 : index
    %c0_64 = arith.constant 0 : index
    %c0_65 = arith.constant 0 : index
    %192 = vector.load %arg9[%c0_63, %c0_64, %c0_65] : memref<1x64x32xbf16, #tpu.memory_space<vmem>>, vector<1x64x32xbf16>
    %193 = vector.shape_cast %192 : vector<1x64x32xbf16> to vector<64x32xbf16>
    %cst_66 = arith.constant dense<0.000000e+00> : vector<24x32xf32>
    %194 = tpu.matmul %191, %193, %cst_66 {dimension_numbers = #tpu.dot_dimension_numbers<[1], [0], [0], [1], [0, 0, 1, 1], [], []>} : vector<24x64xbf16>, vector<64x32xbf16>, vector<24x32xf32> -> vector<24x32xf32>
    %195 = arith.addf %152, %194 : vector<24x32xf32>
    %196 = vector.broadcast %10 : vector<1x32xf32> to vector<24x32xf32>
    %197 = arith.addf %195, %196 : vector<24x32xf32>
    %198 = vector.shape_cast %197 : vector<24x32xf32> to vector<1x24x32xf32>
    %c0_67 = arith.constant 0 : index
    %c0_68 = arith.constant 0 : index
    %c0_69 = arith.constant 0 : index
    %199 = vector.load %arg10[%c0_67, %c0_68, %c0_69] : memref<1x24x32xf32, #tpu.memory_space<vmem>>, vector<1x24x32xf32>
    tpu.vector_store %arg10[%c0_67, %c0_68, %c0_69], %198 {strides = array<i32>} : memref<1x24x32xf32, #tpu.memory_space<vmem>>, vector<1x24x32xf32>,
    return
  }
  func.func @transform_0(%arg0: i32, %arg1: i32) -> (i32, i32, i32) {
    %c0_i32 = arith.constant 0 : i32
    %c0_i32_0 = arith.constant 0 : i32
    %c0_i32_1 = arith.constant 0 : i32
    return %arg0, %c0_i32, %c0_i32_0 : i32, i32, i32
  }
  func.func @transform_1(%arg0: i32, %arg1: i32) -> (i32, i32, i32) {
    %c0_i32 = arith.constant 0 : i32
    %c0_i32_0 = arith.constant 0 : i32
    %c0_i32_1 = arith.constant 0 : i32
    return %arg1, %c0_i32, %c0_i32_0 : i32, i32, i32
  }
  func.func @transform_2(%arg0: i32, %arg1: i32) -> (i32, i32, i32) {
    %c0_i32 = arith.constant 0 : i32
    %c0_i32_0 = arith.constant 0 : i32
    %c0_i32_1 = arith.constant 0 : i32
    return %arg1, %c0_i32, %c0_i32_0 : i32, i32, i32
  }
  func.func @transform_3(%arg0: i32, %arg1: i32) -> (i32, i32, i32) {
    %c0_i32 = arith.constant 0 : i32
    %c0_i32_0 = arith.constant 0 : i32
    %c0_i32_1 = arith.constant 0 : i32
    return %arg1, %c0_i32, %c0_i32_0 : i32, i32, i32
  }
  func.func @transform_4(%arg0: i32, %arg1: i32) -> (i32, i32, i32) {
    %c0_i32 = arith.constant 0 : i32
    %c0_i32_0 = arith.constant 0 : i32
    %c0_i32_1 = arith.constant 0 : i32
    return %arg1, %c0_i32, %c0_i32_0 : i32, i32, i32
  }
  func.func @transform_5(%arg0: i32, %arg1: i32) -> (i32, i32, i32) {
    %c0_i32 = arith.constant 0 : i32
    %c0_i32_0 = arith.constant 0 : i32
    %c0_i32_1 = arith.constant 0 : i32
    return %arg1, %c0_i32, %c0_i32_0 : i32, i32, i32
  }
  func.func @transform_6(%arg0: i32, %arg1: i32) -> (i32, i32, i32) {
    %c0_i32 = arith.constant 0 : i32
    %c0_i32_0 = arith.constant 0 : i32
    %c0_i32_1 = arith.constant 0 : i32
    return %arg1, %c0_i32, %c0_i32_0 : i32, i32, i32
  }
  func.func @transform_7(%arg0: i32, %arg1: i32) -> (i32, i32, i32) {
    %c0_i32 = arith.constant 0 : i32
    %c0_i32_0 = arith.constant 0 : i32
    %c0_i32_1 = arith.constant 0 : i32
    return %arg1, %c0_i32, %c0_i32_0 : i32, i32, i32
  }
  func.func @transform_8(%arg0: i32, %arg1: i32) -> (i32, i32, i32) {
    %c0_i32 = arith.constant 0 : i32
    %c0_i32_0 = arith.constant 0 : i32
    %c0_i32_1 = arith.constant 0 : i32
    return %arg0, %c0_i32, %c0_i32_0 : i32, i32, i32
  }
}

module attributes {stable_mosaic.version = 11 : i64} {
  func.func @_head_kernel(%arg0: memref<2x24x32xf32, #tpu.memory_space<vmem>>, %arg1: memref<1x32xf32, #tpu.memory_space<vmem>>, %arg2: memref<1x32xf32, #tpu.memory_space<vmem>>, %arg3: memref<32x10xbf16, #tpu.memory_space<vmem>>, %arg4: memref<1x10xf32, #tpu.memory_space<vmem>>, %arg5: memref<2x10xf32, #tpu.memory_space<vmem>>) attributes {dimension_semantics = [], scalar_prefetch = 0 : i64, scratch_operands = 0 : i64, tpu.core_type = #tpu.core_type<tc>} {
    %c0 = arith.constant 0 : index
    %c0_0 = arith.constant 0 : index
    %c0_1 = arith.constant 0 : index
    %0 = vector.load %arg0[%c0, %c0_0, %c0_1] : memref<2x24x32xf32, #tpu.memory_space<vmem>>, vector<2x1x32xf32>
    %1 = vector.shape_cast %0 : vector<2x1x32xf32> to vector<2x32xf32>
    %cst = arith.constant dense<0.000000e+00> : vector<2xf32>
    %2 = vector.multi_reduction <add>, %1, %cst [1] : vector<2x32xf32> to vector<2xf32>
    %3 = vector.shape_cast %2 : vector<2xf32> to vector<2x1xf32>
    %cst_2 = arith.constant 3.200000e+01 : f32
    %4 = vector.broadcast %cst_2 : f32 to vector<2x1xf32>
    %5 = arith.divf %3, %4 : vector<2x1xf32>
    %6 = vector.broadcast %5 : vector<2x1xf32> to vector<2x32xf32>
    %7 = arith.subf %1, %6 : vector<2x32xf32>
    %8 = arith.mulf %7, %7 : vector<2x32xf32>
    %cst_3 = arith.constant dense<0.000000e+00> : vector<2xf32>
    %9 = vector.multi_reduction <add>, %8, %cst_3 [1] : vector<2x32xf32> to vector<2xf32>
    %10 = vector.shape_cast %9 : vector<2xf32> to vector<2x1xf32>
    %cst_4 = arith.constant 3.200000e+01 : f32
    %11 = vector.broadcast %cst_4 : f32 to vector<2x1xf32>
    %12 = arith.divf %10, %11 : vector<2x1xf32>
    %13 = vector.broadcast %5 : vector<2x1xf32> to vector<2x32xf32>
    %14 = arith.subf %1, %13 : vector<2x32xf32>
    %cst_5 = arith.constant 9.99999974E-6 : f32
    %15 = vector.broadcast %cst_5 : f32 to vector<2x1xf32>
    %16 = arith.addf %12, %15 : vector<2x1xf32>
    %17 = math.rsqrt %16 : vector<2x1xf32>
    %18 = vector.broadcast %17 : vector<2x1xf32> to vector<2x32xf32>
    %19 = arith.mulf %14, %18 : vector<2x32xf32>
    %c0_6 = arith.constant 0 : index
    %c0_7 = arith.constant 0 : index
    %20 = vector.load %arg1[%c0_6, %c0_7] : memref<1x32xf32, #tpu.memory_space<vmem>>, vector<1x32xf32>
    %21 = vector.broadcast %20 : vector<1x32xf32> to vector<2x32xf32>
    %22 = arith.mulf %19, %21 : vector<2x32xf32>
    %c0_8 = arith.constant 0 : index
    %c0_9 = arith.constant 0 : index
    %23 = vector.load %arg2[%c0_8, %c0_9] : memref<1x32xf32, #tpu.memory_space<vmem>>, vector<1x32xf32>
    %24 = vector.broadcast %23 : vector<1x32xf32> to vector<2x32xf32>
    %25 = arith.addf %22, %24 : vector<2x32xf32>
    %26 = arith.truncf %25 : vector<2x32xf32> to vector<2x32xbf16>
    %c0_10 = arith.constant 0 : index
    %c0_11 = arith.constant 0 : index
    %27 = vector.load %arg3[%c0_10, %c0_11] : memref<32x10xbf16, #tpu.memory_space<vmem>>, vector<32x10xbf16>
    %cst_12 = arith.constant dense<0.000000e+00> : vector<2x10xf32>
    %28 = tpu.matmul %26, %27, %cst_12 {dimension_numbers = #tpu.dot_dimension_numbers<[1], [0], [0], [1], [0, 0, 1, 1], [], []>} : vector<2x32xbf16>, vector<32x10xbf16>, vector<2x10xf32> -> vector<2x10xf32>
    %c0_13 = arith.constant 0 : index
    %c0_14 = arith.constant 0 : index
    %29 = vector.load %arg4[%c0_13, %c0_14] : memref<1x10xf32, #tpu.memory_space<vmem>>, vector<1x10xf32>
    %30 = vector.broadcast %29 : vector<1x10xf32> to vector<2x10xf32>
    %31 = arith.addf %28, %30 : vector<2x10xf32>
    %c0_15 = arith.constant 0 : index
    %c0_16 = arith.constant 0 : index
    %32 = vector.load %arg5[%c0_15, %c0_16] : memref<2x10xf32, #tpu.memory_space<vmem>>, vector<2x10xf32>
    tpu.vector_store %arg5[%c0_15, %c0_16], %31 {strides = array<i32>} : memref<2x10xf32, #tpu.memory_space<vmem>>, vector<2x10xf32>,
    return
  }
}

</mosaic_0001>

<bundles_post_ra>
// kernel: vit_forward.5
= control target key start
LH: loop header
LB: loop body
LE: loop exit
PB: predicated region body
PF: predicated region fallthrough
CT: control target
= control target key end

     0   :  { %vm27_vm0 = vcmask 1041409   ;;  %vm30_vm1 = vcmask 254976   ;;  %s288_s0 = inlined_call_operand.vmem [shape: f32[2,24,32], index: 0, kind: input, shape index: {}]   ;;  %s289_s1 = inlined_call_operand.vmem [shape: f32[1,32], index: 1, kind: input, shape index: {}]   ;;  %s290_s2 = inlined_call_operand.vmem [shape: f32[1,32], index: 2, kind: input, shape index: {}]   ;;  %s291_s3 = inlined_call_operand.vmem [shape: bf16[32,10], index: 3, kind: input, shape index: {}]   ;;  %s292_s4 = inlined_call_operand.vmem [shape: f32[1,10], index: 4, kind: input, shape index: {}]   ;;  %s293_s5 = inlined_call_operand.hbm [shape: f32[2,10], index: 5, kind: output, shape index: {}]  }
   0x1   :  { %v22_v0 = vld [vmem:[%s288_s0] sm:$0x1]  ;;  %v23_v1 = vld [vmem:[%s288_s0 + $0x18] sm:$0x1] }
   0x2   :  { %v26_v2 = vrot.slane %v23_v1, 7 }
   0x3   :  { %10 = vsyncpa [#allocation3], 0  ;;  %v191_v15 = vld [vmem:[%s291_s3] sm:$0xff]   ;;  %v219_v16 = vmov 0.0   ;;  %vm220_vm2 = vmmov 0   ;;  %v192_v17 = vld [vmem:[%s291_s3 + $0x8] sm:$0xff]  }
   0x4   :  { %v28_v3 = vsel %vm27_vm0, %v26_v2, %v22_v0  ;;  %180 = vmatprep.subr.bf16.mxu0 %v219_v16  ;;  %184 = vmatprep.mubr.msk.bf16.mxu0 %vm220_vm2, %v219_v16  ;;  %v171_v22 = vld [vmem:[%s289_s1] ss:$0 sm:$0xff]  ;;  %vm111_vm3 = vcmask 261120   ;;  %vm155_vm4 = vcmask 74752  }
   0x5   :  { %v31_v4 = vsel %vm30_vm1, %v28_v3, 0.0  ;;  %181 = vmatpush3.bf16.msra.mxu0 %v191_v15  ;;  %v172_v25 = vld [vmem:[%s290_s2] ss:$0 sm:$0xff]  ;;  %s221_s2 = smov [#allocation2]  }
   0x6   :  { %32 = vadd.xlane.f32.xlu0 %v31_v4  ;;  %182 = vmatprep.subr.bf16.mxu0 %v219_v16  ;;  %v173_v38 = vld [vmem:[%s292_s4] ss:$0 sm:$0xff]  ;;  %s163_s29 = sshll.u32 %s221_s2, 4  ;;  %s164_s29 = int_to_ptr.vmem [resolvable:$true] %s163_s29 }
   0x7   :  { %s195_s30 = scalar_lea.vmem %s164_s29, 32  ;;  %p200_p1 = scmp.lt.s32.totalorder %s164_s29, %s164_s29 }
   0x8   :  { %p196_p0 = scmp.ne.s32.totalorder %s164_s29, %s195_s30  ;;  %p201_p2 = scmp.lt.s32.totalorder %s195_s30, %s195_s30 }
   0x9   :  { %183 = vmatpush3.bf16.msra.mxu0 %v192_v17 }
   0xa   :  { %p202_p3 = por %p201_p2, %p200_p1 }
   0xc   :  { %p203_p4 = pnand %p202_p3, %p196_p0 }
  0x93   :  { %v33_v5 = vpop.xlane.xlu0 %32 }
  0x94   :  { %v35_v6 = vmul.f32 0.03125, %v33_v5 }
  0x96   :  { %v37_v7 = vrot.slane %v35_v6, 1  ;;  %v40_v8 = vsub.f32 %v22_v0, %v35_v6 }
  0x98   :  { %v41_v9 = vsub.f32 %v23_v1, %v37_v7  ;;  %v42_v11 = vmul.f32 %v40_v8, %v40_v8 }
  0x9a   :  { %v43_v10 = vmul.f32 %v41_v9, %v41_v9 }
  0x9c   :  { %v46_v12 = vrot.slane %v43_v10, 7 }
  0x9e   :  { %v47_v13 = vsel %vm27_vm0, %v46_v12, %v42_v11 }
  0x9f   :  { %v49_v14 = vsel %vm30_vm1, %v47_v13, 0.0 }
  0xa0   :  { %50 = vadd.xlane.f32.xlu0 %v49_v14 }
 0x12d   :  { %v51_v18 = vpop.xlane.xlu0 %50 }
 0x12e   :  { %v52_v19 = vmul.f32 0.03125, %v51_v18 }
 0x130   :  { %v53_v20 = vadd.f32 1e-05, %v52_v19 }
 0x132   :  { %193 = vrsqrt.f32 %v53_v20 }
 0x13c   :  { %v194_v21 = vpop.eup %193 }
 0x13d   :  { %v56_v23 = vrot.slane %v194_v21, 1  ;;  %v59_v24 = vmul.f32 %v194_v21, %v40_v8 }
 0x13f   :  { %v60_v26 = vmul.f32 %v56_v23, %v41_v9  ;;  %v68_v27 = vmul.f32 %v171_v22, %v59_v24 }
 0x141   :  { %v69_v28 = vmul.f32 %v171_v22, %v60_v26  ;;  %v77_v29 = vadd.f32 %v172_v25, %v68_v27 }
 0x143   :  { %v78_v30 = vadd.f32 %v172_v25, %v69_v28  ;;  %v79_v31 = vpack.c.bf16 %v77_v29, %v77_v29 }
 0x145   :  { %v80_v32 = vpack.c.bf16 %v78_v30, %v78_v30  ;;  %v94_v34 = vunpack.c.l.b16 %v79_v31 }
 0x147   :  { %v95_v33 = vunpack.c.l.b16 %v80_v32 }
 0x149   :  { %v96_v35 = vrot.slane %v95_v33, 7 }
 0x14b   :  { %v97_v36 = vsel %vm27_vm0, %v96_v35, %v94_v34 }
 0x14c   :  { %v98_v37 = vpack.c.b16 %v97_v36, %v97_v36 }
 0x14e   :  { %185 = vmatmul.mubr.msk.bf16.vlgmr.msra.gmra.mrb[0].mxu0 %vm111_vm3, %v98_v37 }
 0x221   :  { %v149_v39 = vpop.f32.mrb[0].mxu0 }
 0x222   :  { %v150_v40 = vadd.f32 %v173_v38, %v149_v39  ;;  %v186_v41 = vpop.f32.mrb[1].mxu0 }
 0x223   :  { %v152_v42 = vpop.f32.mrb[2].mxu0 }
 0x224   :  { %v187_v43 = vpop.f32.mrb[3].mxu0  ;;  %156 = vst.msk [vmem:[#allocation2] sm:$0x3] %vm155_vm4, %v150_v40 }
 0x225   :  { %206 = shalt.err (!%p203_p4)
}
 0x226   :  { %s207_s4 = scalar_lea.hbm %s293_s5, 32 }
 0x227   :  { %p208_p5 = scmp.ne.s32.totalorder %s293_s5, %s207_s4  ;;  %p211_p6 = scmp.lt.u32.totalorder %s207_s4, %s293_s5 }
 0x229   :  { %p213_p7 = pnand %p211_p6, %p208_p5 }
 0x22b   :  { %216 = shalt.err (!%p213_p7)
}
 0x22c   :  { %166 = dma.vmem_to_hbm [thread:$0]  %s164_s29, 32, %s293_s5, [#allocation3]  }
 0x22d   :  { %217 = dma.done.wait [#allocation3], 32  }
 0x22e   :  { %218 = vsyncadd [#allocation3], 4294967264 }
 0x22f   :  { %170 = vsyncpa [#allocation3], 1 }

// kernel: vit_forward.3
= control target key start
LH: loop header
LB: loop body
LE: loop exit
PB: predicated region body
PF: predicated region fallthrough
CT: control target
= control target key end

     0   :  { %s390_s12 = smov 0   ;;  %s425_s0 = inlined_call_operand.vmem [shape: f32[2,24,48], index: 0, kind: input, shape index: {}]   ;;  %s426_s1 = inlined_call_operand.vmem [shape: bf16[48,32], index: 1, kind: input, shape index: {}]   ;;  %s427_s2 = inlined_call_operand.vmem [shape: f32[24,32], index: 2, kind: input, shape index: {}]   ;;  %s428_s3 = inlined_call_operand.vmem [shape: f32[2,24,32], index: 3, kind: output, shape index: {}]  }
   0x1 LB: > { %s321_s13 = sadd.s32 4294967295, %s368_s12   ;;  %p325_p0 = scmp.ge.s32.totalorder %s368_s12, 1  ;;  %s368_s12 = sphi %s390_s12, %s13_s12  }
   0x2   : > { %p137_p1 = scmp.lt.s32.totalorder %s368_s12, 3 }
   0x4   : > { %p138_p2 = pnand %p325_p0, %p137_p1 }
   0x5   : > { %v359_v0 = vld [vmem:[%s426_s1] sm:$0xff] (!%p138_p2)   ;;  %p161_p3 = scmp.lt.s32.totalorder (!%p138_p2), %s321_s13, 1  ;;  %v360_v1 = vld [vmem:[%s426_s1 + $0x8] sm:$0xff] (!%p138_p2)   ;;  %v361_v2 = vld [vmem:[%s426_s1 + $0x10] sm:$0xff] (!%p138_p2)   ;;  %vm201_vm0 = vcmask (!%p138_p2), 392192   ;;  %vm262_vm1 = vcmask (!%p138_p2), 261120  }
   0x6   : > { %141 = sbr.rel (%p138_p2) target bundleno = 239 (0xef), region = 32  ;;  %340 = vmatprep.subr.bf16.mxu0 (!%p138_p2), %v359_v0  ;;  %v258_v8 = vld [vmem:[%s427_s2 + $0x10] sm:$0xff] (!%p138_p2)  ;;  %v256_v9 = vld [vmem:[%s427_s2] sm:$0xff] (!%p138_p2)  ;;  %v257_v13 = vld [vmem:[%s427_s2 + $0x8] sm:$0xff] (!%p138_p2) }
   0x7   : > { %341 = vmatpush3.bf16.msra.mxu0 (!%p138_p2), %v359_v0 }
   0x8   : > { %342 = vmatprep.subr.bf16.mxu0 (!%p138_p2), %v360_v1 }
   0xb   : > { %343 = vmatpush3.bf16.msra.mxu0 (!%p138_p2), %v360_v1 }
   0xc   : > { %344 = vmatprep.subr.bf16.mxu0 (!%p138_p2), %v361_v2 }
   0xd   : > { %s430_s13 = smov (!%p161_p3, %s321_s13), 1 }
   0xe   : > { %s350_s20 = smul.u32 24, %s430_s13 }
   0xf   : > { %345 = vmatpush3.bf16.msra.mxu0 %v361_v2 }
  0x10   : > { %s165_s23 = scalar_lea.vmem %s425_s0, %s350_s20  ;;  %s170_s30 = scalar_lea.vmem %s428_s3, %s350_s20 }
  0x11   : > { %v172_v3 = vld [vmem:[%s165_s23] sm:$0xff]  ;;  %v173_v4 = vld [vmem:[%s165_s23 + $0x8] sm:$0xff]  ;;  %v174_v5 = vld [vmem:[%s165_s23 + $0x10] sm:$0xff] }
  0x12   : > { %v175_v6 = vpack.c.bf16 %v173_v4, %v172_v3  ;;  %v176_v7 = vpack.c.bf16 %v174_v5, %v174_v5 }
  0x14   : > { %346 = vmatprep.mubr.msk.bf16.mxu0 %vm201_vm0, %v175_v6 }
  0x15   : > { %347 = vmatmul.mubr.msk.bf16.vlgmr.msra.gmra.mrb[0].mxu0 %vm201_vm0, %v176_v7 }
  0xe8   : > { %v348_v10 = vpop.f32.mrb[0].mxu0 }
  0xe9   : > { %v261_v11 = vadd.f32 %v348_v10, %v258_v8  ;;  %v242_v12 = vpop.f32.mrb[1].mxu0 }
  0xea   : > { %v259_v14 = vadd.f32 %v256_v9, %v242_v12  ;;  %v349_v15 = vpop.f32.mrb[2].mxu0 }
  0xeb   : > { %265 = vst.msk [vmem:[%s170_s30 + $0x10] sm:$0xff] %vm262_vm1, %v261_v11  ;;  %v245_v16 = vpop.f32.mrb[3].mxu0 }
  0xec   : > { %263 = vst.msk [vmem:[%s170_s30] sm:$0xff] %vm262_vm1, %v259_v14  ;;  %v260_v17 = vadd.f32 %v257_v13, %v245_v16 }
  0xee   : > { %264 = vst.msk [vmem:[%s170_s30 + $0x8] sm:$0xff] %vm262_vm1, %v260_v17 }
  0xef PF: > { %s13_s12 = sadd.s32 1, %s368_s12  }
  0xf0   : > { %p10_p4 = scmp.ge.s32.totalorder %s13_s12, 4  }
  0xf2   :  { %12 = sbr.rel (!%p10_p4) target bundleno = 1 (0x1), region = 62 }

// kernel: vit_forward.4
= control target key start
LH: loop header
LB: loop body
LE: loop exit
PB: predicated region body
PF: predicated region fallthrough
CT: control target
= control target key end

     0   :  { %s2254_s27 = smov 0   ;;  %s2256_s28 = smov 0   ;;  %s2584_s0 = inlined_call_operand.vmem [shape: f32[2,24,32], index: 0, kind: input, shape index: {}, may-alias: {0,8}]   ;;  %s2585_s1 = inlined_call_operand.vmem [shape: f32[2,8,32], index: 1, kind: input, shape index: {}]   ;;  %s2586_s2 = inlined_call_operand.vmem [shape: bf16[2,32,96], index: 2, kind: input, shape index: {}]   ;;  %s2587_s3 = inlined_call_operand.vmem [shape: f32[2,1,96], index: 3, kind: input, shape index: {}]   ;;  %s2588_s4 = inlined_call_operand.vmem [shape: bf16[2,32,32], index: 4, kind: input, shape index: {}]   ;;  %s2589_s5 = inlined_call_operand.vmem [shape: bf16[2,32,64], index: 5, kind: input, shape index: {}]   ;;  %s2590_s6 = inlined_call_operand.vmem [shape: f32[2,1,64], index: 6, kind: input, shape index: {}]   ;;  %s2591_s7 = inlined_call_operand.vmem [shape: bf16[2,64,32], index: 7, kind: input, shape index: {}]   ;;  %s2592_s8 = inlined_call_operand.vmem [shape: f32[2,24,32], index: 8, kind: output, shape index: {}, may-alias: {0,8}]  }
   0x1   :  { %2594 = sst [smem:[#allocation6_spill]] %s2584_s0  ;;  %s2258_s29 = smov 0  }
   0x2   :  { %2595 = sst [smem:[#allocation7_spill]] %s2585_s1  ;;  %s2260_s30 = smov 0  }
   0x3   :  { %s2262_s9 = smov 0  }
   0x4 LB: > { %2596 = sst [smem:[#allocation3_spill]] %s2189_s30  ;;  %s27_s10 = sadd.s32 1, %s2185_s29  ;;  %s2193_s9 = sphi %s2262_s9, %s18_s9   ;;  %s2189_s30 = sphi %s2260_s30, %s2604_s30   ;;  %s2185_s29 = sphi %s2258_s29, %s2606_s29   ;;  %s2181_s28 = sphi %s2256_s28, %s2602_s28   ;;  %s2177_s27 = sphi %s2254_s27, %s2605_s27  }
   0x5   : > { %s30_s11 = sadd.s32 1, %s2189_s30  ;;  %p28_p0 = scmp.ge.s32.totalorder %s27_s10, 2 }
   0x6   : > { %p1806_p1 = scmp.ge.s32.totalorder %s2193_s9, 1  ;;  %p339_p2 = scmp.lt.s32.totalorder %s2193_s9, 5 }
   0x7   : > { %s2608_s10 = smov (%p28_p0, %s27_s10), 0  ;;  %s2610_s11 = smov (!%p28_p0, %s30_s11), %s2189_s30 }
   0x8   : > { %2597 = sst [smem:[#allocation4_spill]] %s2608_s10  ;;  %p340_p3 = pnand %p1806_p1, %p339_p2 }
   0x9   : > { %p32_p4 = scmp.ge.s32.totalorder %s2610_s11, 2  ;;  %p403_p5 = scmp.lt.s32.totalorder (!%p340_p3), %s2181_s28, 1 }
   0xa   : > { %343 = sbr.rel (%p340_p3) target bundleno = 4237 (0x108d), region = 52  ;;  %p408_p6 = scmp.lt.s32.totalorder (!%p340_p3), %s2177_s27, 1 }
   0xb   : > { %s2612_s11 = smov (%p32_p4, %s2610_s11), 0  ;;  %s2599_s0 = sld [smem:[#allocation6_spill]] (!%p340_p3) }
   0xc   : > { %2598 = sst [smem:[#allocation5_spill]] %s2612_s11  ;;  %s2600_s1 = sld [smem:[#allocation7_spill]] (!%p340_p3) }
   0xd   : > { %p1818_p7 = scmp.ne.s32.totalorder (!%p340_p3), %s2177_s27, 0 }
  0x11   : > { %s2614_s28 = smov (!%p403_p5, %s2181_s28), 1  ;;  %vm451_vm0 = vcmask (!%p1818_p7), 261120  }
  0x12   : > { %s2288_s12 = scalar_select %p408_p6, %s2177_s27, 1 }
  0x13   : > { %s2023_s13 = smul.u32 24, %s2614_s28 }
  0x14   : > { %s1808_s14 = sshll.u32 %s2288_s12, 3  ;;  %s1857_s15 = sshll.u32 %s2288_s12, 4 }
  0x15   : > { %s407_s18 = scalar_lea.vmem %s2599_s0, %s2023_s13  ;;  %s2298_s21 = scalar_lea.vmem %s2600_s1, %s1808_s14 }
  0x16   : > { %s2303_s24 = scalar_lea.vmem %s2586_s2, %s1857_s15  ;;  %s2312_s30 = scalar_lea.vmem %s2588_s4, %s1857_s15  ;;  %v448_v0 = vld [vmem:[%s407_s18] sm:$0xff] (!%p1818_p7)  ;;  %v449_v1 = vld [vmem:[%s407_s18 + $0x8] sm:$0xff] (!%p1818_p7)  ;;  %v450_v2 = vld [vmem:[%s407_s18 + $0x10] sm:$0xff] (!%p1818_p7) }
  0x17   : > { %s2317_s19 = scalar_lea.vmem %s2589_s5, %s1857_s15  ;;  %s432_s22 = scalar_lea.vmem %s2590_s6, %s2288_s12 }
  0x18   : > { %s1860_s23 = sshll.u32 %s2288_s12, 5  ;;  %s2332_s10 = scalar_lea.vmem %s2592_s8, %s2023_s13 }
  0x19   : > { %s2327_s25 = scalar_lea.vmem %s2591_s7, %s1860_s23  ;;  %447 = sbr.rel (%p1818_p7) target bundleno = 32 (0x20), region = 56  ;;  %452 = vst.msk [vmem:[%s2332_s10] sm:$0xff] (!%p1818_p7), %vm451_vm0, %v448_v0  ;;  %453 = vst.msk [vmem:[%s2332_s10 + $0x8] sm:$0xff] (!%p1818_p7), %vm451_vm0, %v449_v1 }
  0x1a   : > { %454 = vst.msk [vmem:[%s2332_s10 + $0x10] sm:$0xff] (!%p1818_p7), %vm451_vm0, %v450_v2 }
  0x20 PF: > { %v2339_v3 = vld [vmem:[%s2332_s10] sm:$0xff]  ;;  %vm459_vm1 = vcmask 261120   ;;  %v2345_v5 = vld [vmem:[%s2332_s10 + $0x8] sm:$0xff]  ;;  %v500_v33 = vlaneseq  ;;  %s2601_s27 = scalar_lea.vmem %s2587_s3, %s2288_s12  ;;  %s2195_s11 = smov 96   ;;  %vm604_vm2 = vcmask 64512   ;;  %vm670_vm4 = vcmask 195584  }
  0x21   : > { %v2342_v4 = vld [vmem:[%s2332_s10 + $0x10] sm:$0xff]  ;;  %v460_v6 = vsel %vm459_vm1, %v2339_v3, 0.0  ;;  %v463_v8 = vsel %vm459_vm1, %v2345_v5, 0.0  ;;  %v2078_v24 = vld [vmem:[%s2303_s24] sm:$0xff]   ;;  %v2079_v25 = vld [vmem:[%s2303_s24 + $0x8] sm:$0xff]   ;;  %s2196_s13 = smov 64  }
  0x22   : > { %v466_v7 = vsel %vm459_vm1, %v2342_v4, 0.0  ;;  %461 = vadd.xlane.f32.xlu0 %v460_v6  ;;  %1911 = vmatprep.subr.bf16.mxu0 %v2078_v24  ;;  %v2361_v36 = vshrl.u32 %v500_v33, 7  ;;  %v2365_v38 = vld [vmem:[%s2298_s21] sm:$0xff]  ;;  %s2197_s15 = smov 120   ;;  %s2198_s18 = smov 88   ;;  %vm717_vm5 = vcmask 1043456  }
  0x23   : > { %467 = vadd.xlane.f32.xlu1 %v466_v7  ;;  %1912 = vmatpush3.bf16.msra.mxu0 %v2078_v24  ;;  %v1819_v56 = vld [vmem:[%s2601_s27] ss:$0 sm:$0xff]  ;;  %s2199_s24 = smov 56   ;;  %s2200_s28 = smov 80   ;;  %vm952_vm6 = vcmask 130112   ;;  %vm1136_vm7 = vcmask 195712  }
  0x24   : > { %1913 = vmatprep.subr.bf16.mxu0 %v2079_v25  ;;  %v502_v37 = vsub.s32 0, %v2361_v36  ;;  %v509_v42 = vsub.s32 1, %v2361_v36  ;;  %s2201_s16 = smov 112   ;;  %s2202_s17 = smov 48   ;;  %vm1320_vm8 = vcmask 261312   ;;  %vm1590_vm9 = vcmask 523264  }
  0x25   : > { %s2203_s14 = smov 72   ;;  %s2204_s20 = smov 104  }
  0x26   : > { %464 = vadd.xlane.f32.xlu0 %v463_v8  ;;  %v503_v41 = vrot.slane %v2365_v38, %v502_v37  ;;  %v510_v48 = vrot.slane %v2365_v38, %v509_v42  ;;  %s2205_s23 = smov 40   ;;  %s2206_s26 = smov 8  }
  0x27   : > { %1914 = vmatpush3.bf16.msra.mxu0 %v2079_v25  ;;  %s2207_s0 = smov 16   ;;  %s2208_s1 = smov 24  }
  0xaf   : > { %v462_v9 = vpop.xlane.xlu0 %461 }
  0xb0   : > { %v468_v10 = vpop.xlane.xlu1 %467  ;;  %v470_v11 = vmul.f32 0.03125, %v462_v9  ;;  %v2391_v9 = vand.u32 127, %v500_v33 }
  0xb1   : > { %v472_v12 = vmul.f32 0.03125, %v468_v10 }
  0xb2   : > { %v473_v13 = vsub.f32 %v2339_v3, %v470_v11  ;;  %vm595_vm3 = vcmp.lt.s32.totalorder %v2391_v9, 17 }
  0xb3   : > { %v475_v14 = vsub.f32 %v2342_v4, %v472_v12  ;;  %v465_v15 = vpop.xlane.xlu0 %464 }
  0xb4   : > { %v471_v16 = vmul.f32 0.03125, %v465_v15  ;;  %v476_v17 = vmul.f32 %v473_v13, %v473_v13 }
  0xb5   : > { %v478_v18 = vmul.f32 %v475_v14, %v475_v14 }
  0xb6   : > { %v474_v19 = vsub.f32 %v2345_v5, %v471_v16  ;;  %v479_v20 = vsel %vm459_vm1, %v476_v17, 0.0 }
  0xb7   : > { %480 = vadd.xlane.f32.xlu1 %v479_v20  ;;  %v485_v21 = vsel %vm459_vm1, %v478_v18, 0.0 }
  0xb8   : > { %v477_v22 = vmul.f32 %v474_v19, %v474_v19 }
  0xba   : > { %v482_v23 = vsel %vm459_vm1, %v477_v22, 0.0 }
  0xbb   : > { %486 = vadd.xlane.f32.xlu1 %v485_v21  ;;  %483 = vadd.xlane.f32.xlu0 %v482_v23 }
 0x144   : > { %v481_v26 = vpop.xlane.xlu1 %480 }
 0x145   : > { %v488_v27 = vmul.f32 0.03125, %v481_v26 }
 0x147   : > { %v491_v28 = vadd.f32 1e-05, %v488_v27 }
 0x148   : > { %v487_v29 = vpop.xlane.xlu1 %486  ;;  %v484_v30 = vpop.xlane.xlu0 %483 }
 0x149   : > { %2088 = vrsqrt.f32 %v491_v28  ;;  %v490_v31 = vmul.f32 0.03125, %v487_v29  ;;  %v489_v32 = vmul.f32 0.03125, %v484_v30 }
 0x14b   : > { %v493_v34 = vadd.f32 1e-05, %v490_v31  ;;  %v492_v35 = vadd.f32 1e-05, %v489_v32 }
 0x14d   : > { %2090 = vrsqrt.f32 %v493_v34 }
 0x14e   : > { %2092 = vrsqrt.f32 %v492_v35 }
 0x153   : > { %v2089_v39 = vpop.eup %2088 }
 0x154   : > { %v497_v40 = vmul.f32 %v2089_v39, %v473_v13 }
 0x156   : > { %v504_v47 = vmul.f32 %v503_v41, %v497_v40 }
 0x157   : > { %v2091_v43 = vpop.eup %2090 }
 0x158   : > { %v2093_v44 = vpop.eup %2092  ;;  %v499_v45 = vmul.f32 %v2091_v43, %v475_v14  ;;  %v511_v52 = vadd.f32 %v510_v48, %v504_v47 }
 0x159   : > { %v498_v46 = vmul.f32 %v2093_v44, %v474_v19 }
 0x15a   : > { %v506_v49 = vmul.f32 %v503_v41, %v499_v45 }
 0x15b   : > { %v505_v50 = vmul.f32 %v503_v41, %v498_v46 }
 0x15c   : > { %v513_v51 = vadd.f32 %v510_v48, %v506_v49 }
 0x15d   : > { %v512_v53 = vadd.f32 %v510_v48, %v505_v50 }
 0x15e   : > { %v515_v54 = vpack.c.bf16 %v513_v51, %v513_v51 }
 0x15f   : > { %v514_v55 = vpack.c.bf16 %v512_v53, %v511_v52 }
 0x161   : > { %1915 = vmatprep.mubr.msk.bf16.mxu0 %vm459_vm1, %v514_v55 }
 0x162   : > { %1916 = vmatmul.mubr.msk.bf16.vlgmr.msra.gmra.mrb[0].mxu0 %vm459_vm1, %v515_v54 }
 0x235   : > { %v1917_v57 = vpop.f32.mrb[0].mxu0 }
 0x236   : > { %v588_v58 = vadd.f32 %v1917_v57, %v1819_v56  ;;  %v579_v59 = vpop.f32.mrb[1].mxu0 }
 0x237   : > { %v1918_v60 = vpop.f32.mrb[2].mxu0  ;;  %v580_v63 = vadd.f32 %v1819_v56, %v579_v59 }
 0x238   : > { %v2377_v61 = vpack.c.bf16 %v588_v58, %v588_v58  ;;  %v582_v62 = vpop.f32.mrb[3].mxu0 }
 0x239   : > { %v583_v0 = vadd.f32 %v1819_v56, %v582_v62 }
 0x23a   : > { %602 = vrot.lane.b32.xlu1 %v2377_v61, %s2195_s11 }
 0x23b   : > { %v2380_v1 = vpack.c.bf16 %v583_v0, %v580_v63 }
 0x23d   : > { %600 = vrot.lane.b32.xlu0 %v2380_v1, %s2195_s11  ;;  %1923 = vmatprep.mubr.msk.bf16.mxu1 %vm604_vm2, %v2380_v1 }
 0x2ac   : > { %v603_v7 = vpop.permute.xlu1 %602 }
 0x2ad   : > { %v615_v8 = vsel %vm604_vm2, %v603_v7, 0 }
 0x2af   : > { %v601_v2 = vpop.permute.xlu0 %600 }
 0x2b0   : > { %2011 = vmatprep.subr.msk.bf16.mxu1 %vm604_vm2, %v601_v2  ;;  %v612_v6 = vsel %vm604_vm2, %v601_v2, 0 }
 0x2b1   : > { %1920 = vmatpush3.bf16.xpose.msra.mxu1 %v612_v6 }
 0x2b2   : > { %2012 = vmatprep.subr.msk.bf16.mxu1 %vm604_vm2, %v603_v7 }
 0x2b9   : > { %1922 = vmatpush3.bf16.xpose.msra.mxu1 %v615_v8 }
 0x2c0   : > { %1924 = vmatmul.mubr.msk.bf16.vlgmr.msra.gmra.mrb[0].mxu1 %vm604_vm2, %v2377_v61 }
 0x393   : > { %v1925_v10 = vpop.f32.mrb[0].mxu1 }
 0x394   : > { %v651_v11 = vpop.f32.mrb[1].mxu1  ;;  %v669_v18 = vsel %vm595_vm3, %v1925_v10, -1e+30 }
 0x395   : > { %v667_v12 = vsel %vm595_vm3, %v651_v11, -1e+30  ;;  %v1926_v13 = vpop.f32.mrb[2].mxu1  ;;  %v677_v19 = vsel %vm670_vm4, %v669_v18, -inf }
 0x396   : > { %v654_v14 = vpop.f32.mrb[3].mxu1  ;;  %v671_v15 = vsel %vm670_vm4, %v667_v12, -inf }
 0x397   : > { %v668_v16 = vsel %vm595_vm3, %v654_v14, -1e+30  ;;  %672 = vmax.xlane.f32.xlu1 %v671_v15 }
 0x398   : > { %v674_v17 = vsel %vm670_vm4, %v668_v16, -inf }
 0x399   : > { %675 = vmax.xlane.f32.xlu0 %v674_v17 }
 0x39d   : > { %678 = vmax.xlane.f32.xlu0 %v677_v19 }
 0x424   : > { %v673_v20 = vpop.xlane.xlu1 %672 }
 0x425   : > { %v680_v23 = vsub.f32 %v667_v12, %v673_v20 }
 0x426   : > { %v676_v21 = vpop.xlane.xlu0 %675 }
 0x427   : > { %v681_v22 = vsub.f32 %v668_v16, %v676_v21  ;;  %v683_v27 = vmul.f32 1.442695, %v680_v23 }
 0x429   : > { %v685_v24 = vmul.f32 1.442695, %v681_v22 }
 0x42a   : > { %v679_v25 = vpop.xlane.xlu0 %678 }
 0x42b   : > { %2094 = vpow2.f32 %v685_v24  ;;  %v682_v26 = vsub.f32 %v669_v18, %v679_v25 }
 0x42d   : > { %v687_v28 = vmul.f32 1.442695, %v682_v26 }
 0x42f   : > { %2096 = vpow2.f32 %v687_v28 }
 0x430   : > { %2098 = vpow2.f32 %v683_v27 }
 0x435   : > { %v2095_v29 = vpop.eup %2094 }
 0x436   : > { %v692_v30 = vsel %vm670_vm4, %v2095_v29, 0.0 }
 0x437   : > { %693 = vadd.xlane.f32.xlu0 %v692_v30 }
 0x439   : > { %v2097_v31 = vpop.eup %2096 }
 0x43a   : > { %v695_v32 = vsel %vm670_vm4, %v2097_v31, 0.0  ;;  %v2099_v33 = vpop.eup %2098 }
 0x43b   : > { %696 = vadd.xlane.f32.xlu1 %v695_v32  ;;  %v689_v34 = vsel %vm670_vm4, %v2099_v33, 0.0 }
 0x43f   : > { %690 = vadd.xlane.f32.xlu1 %v689_v34 }
 0x44d   : > { %706 = vrot.lane.b32.xlu0 %v2380_v1, %s2196_s13 }
 0x450   : > { %708 = vrot.lane.b32.xlu1 %v2377_v61, %s2196_s13 }
 0x451   : > { %772 = vrot.lane.b32.xlu0 %v2380_v1, %s2197_s15 }
 0x454   : > { %776 = vrot.lane.b32.xlu1 %v2380_v1, %s2198_s18 }
 0x458   : > { %778 = vrot.lane.b32.xlu1 %v2377_v61, %s2198_s18 }
 0x45c   : > { %774 = vrot.lane.b32.xlu1 %v2377_v61, %s2197_s15 }
 0x4c4   : > { %v694_v35 = vpop.xlane.xlu0 %693 }
 0x4c8   : > { %v697_v37 = vpop.xlane.xlu1 %696  ;;  %v707_v39 = vpop.permute.xlu0 %706 }
 0x4c9   : > { %1927 = vmatprep.subr.bf16.mxu0 %v707_v39  ;;  %2100 = vrcp.f32 %v697_v37 }
 0x4ca   : > { %1928 = vmatpush3.bf16.msra.mxu0 %v707_v39  ;;  %2102 = vrcp.f32 %v694_v35 }
 0x4cc   : > { %v691_v40 = vpop.xlane.xlu1 %690  ;;  %v773_v52 = vpop.permute.xlu0 %772 }
 0x4cd   : > { %2104 = vrcp.f32 %v691_v40 }
 0x4d0   : > { %v709_v41 = vpop.permute.xlu1 %708 }
 0x4d1   : > { %v719_v42 = vsel %vm717_vm5, %v709_v41, 0  ;;  %2013 = vmatprep.subr.msk.bf16.mxu0 %vm717_vm5, %v709_v41 }
 0x4d2   : > { %1930 = vmatpush3.bf16.msra.mxu0 %v719_v42 }
 0x4d3   : > { %v2101_v43 = vpop.eup %2100 }
 0x4d4   : > { %v777_v44 = vpop.permute.xlu1 %776  ;;  %v2103_v45 = vpop.eup %2102  ;;  %v703_v47 = vmul.f32 %v2101_v43, %v2097_v31 }
 0x4d5   : > { %2014 = vmatprep.subr.msk.bf16.mxu0 %vm604_vm2, %v777_v44  ;;  %v702_v49 = vmul.f32 %v2103_v45, %v2095_v29  ;;  %v787_v53 = vsel %vm604_vm2, %v777_v44, 0 }
 0x4d6   : > { %v705_v51 = vpack.c.bf16 %v703_v47, %v703_v47 }
 0x4d7   : > { %v2105_v46 = vpop.eup %2104 }
 0x4d8   : > { %v701_v48 = vmul.f32 %v2105_v46, %v2099_v33  ;;  %v779_v54 = vpop.permute.xlu1 %778 }
 0x4d9   : > { %v790_v55 = vsel %vm604_vm2, %v779_v54, 0 }
 0x4da   : > { %v704_v50 = vpack.c.bf16 %v702_v49, %v701_v48 }
 0x4dc   : > { %1931 = vmatprep.mubr.msk.bf16.mxu0 %vm670_vm4, %v704_v50  ;;  %v775_v56 = vpop.permute.xlu1 %774 }
 0x4dd   : > { %1932 = vmatmul.mubr.msk.bf16.vlgmr.msra.gmra.mrb[4].mxu0 %vm670_vm4, %v705_v51 }
 0x4de   : > { %1936 = vmatpush3.bf16.xpose.msra.mxu0 %v787_v53  ;;  %1939 = vmatprep.mubr.msk.bf16.mxu0 %vm604_vm2, %v773_v52 }
 0x4df   : > { %2015 = vmatprep.subr.msk.bf16.mxu0 %vm604_vm2, %v779_v54 }
 0x4e6   : > { %1938 = vmatpush3.bf16.xpose.msra.mxu0 %v790_v55 }
 0x4ed   : > { %1940 = vmatmul.mubr.msk.bf16.vlgmr.msra.gmra.mrb[8].mxu0 %vm604_vm2, %v775_v56 }
 0x5b0   : > { %v1933_v57 = vpop.f32.mrb[4].mxu0 }
 0x5b1   : > { %771 = vst.msk [vmem:[#allocation2 + $0x10] sm:$0xff] %vm604_vm2, %v1933_v57  ;;  %v755_v58 = vpop.f32.mrb[5].mxu0 }
 0x5b2   : > { %769 = vst.msk [vmem:[#allocation2] sm:$0xff] %vm604_vm2, %v755_v58  ;;  %v1934_v59 = vpop.f32.mrb[6].mxu0 }
 0x5b3   : > { %v758_v60 = vpop.f32.mrb[7].mxu0 }
 0x5b4   : > { %770 = vst.msk [vmem:[#allocation2 + $0x8] sm:$0xff] %vm604_vm2, %v758_v60 }
 0x5c0   : > { %v1941_v62 = vpop.f32.mrb[8].mxu0 }
 0x5c1   : > { %v826_v63 = vpop.f32.mrb[9].mxu0  ;;  %v842_v8 = vsel %vm595_vm3, %v1941_v62, -1e+30 }
 0x5c2   : > { %v840_v0 = vsel %vm595_vm3, %v826_v63, -1e+30  ;;  %v1942_v2 = vpop.f32.mrb[10].mxu0  ;;  %v849_v12 = vsel %vm670_vm4, %v842_v8, -inf }
 0x5c3   : > { %v829_v6 = vpop.f32.mrb[11].mxu0  ;;  %v843_v7 = vsel %vm670_vm4, %v840_v0, -inf }
 0x5c4   : > { %v841_v10 = vsel %vm595_vm3, %v829_v6, -1e+30  ;;  %844 = vmax.xlane.f32.xlu0 %v843_v7 }
 0x5c5   : > { %v846_v11 = vsel %vm670_vm4, %v841_v10, -inf }
 0x5c6   : > { %847 = vmax.xlane.f32.xlu1 %v846_v11 }
 0x5c8   : > { %850 = vmax.xlane.f32.xlu0 %v849_v12 }
 0x651   : > { %v845_v13 = vpop.xlane.xlu0 %844 }
 0x652   : > { %v852_v14 = vsub.f32 %v840_v0, %v845_v13 }
 0x653   : > { %v848_v15 = vpop.xlane.xlu1 %847 }
 0x654   : > { %v855_v16 = vmul.f32 1.442695, %v852_v14  ;;  %v853_v17 = vsub.f32 %v841_v10, %v848_v15 }
 0x655   : > { %v851_v18 = vpop.xlane.xlu0 %850 }
 0x656   : > { %2106 = vpow2.f32 %v855_v16  ;;  %v857_v19 = vmul.f32 1.442695, %v853_v17  ;;  %v854_v20 = vsub.f32 %v842_v8, %v851_v18 }
 0x658   : > { %2108 = vpow2.f32 %v857_v19  ;;  %v859_v21 = vmul.f32 1.442695, %v854_v20 }
 0x65a   : > { %2110 = vpow2.f32 %v859_v21 }
 0x660   : > { %v2107_v22 = vpop.eup %2106 }
 0x661   : > { %v861_v23 = vsel %vm670_vm4, %v2107_v22, 0.0 }
 0x662   : > { %v2109_v24 = vpop.eup %2108  ;;  %862 = vadd.xlane.f32.xlu0 %v861_v23 }
 0x663   : > { %v864_v27 = vsel %vm670_vm4, %v2109_v24, 0.0 }
 0x664   : > { %v2111_v25 = vpop.eup %2110 }
 0x665   : > { %v867_v26 = vsel %vm670_vm4, %v2111_v25, 0.0 }
 0x666   : > { %868 = vadd.xlane.f32.xlu1 %v867_v26  ;;  %865 = vadd.xlane.f32.xlu0 %v864_v27 }
 0x677   : > { %880 = vrot.lane.b32.xlu1 %v2377_v61, %s2199_s24 }
 0x67b   : > { %960 = vrot.lane.b32.xlu1 %v2380_v1, %s2200_s28 }
 0x67c   : > { %878 = vrot.lane.b32.xlu0 %v2380_v1, %s2199_s24 }
 0x67f   : > { %962 = vrot.lane.b32.xlu1 %v2377_v61, %s2200_s28 }
 0x680   : > { %956 = vrot.lane.b32.xlu0 %v2380_v1, %s2201_s16 }
 0x683   : > { %958 = vrot.lane.b32.xlu1 %v2377_v61, %s2201_s16 }
 0x6ef   : > { %v863_v28 = vpop.xlane.xlu0 %862 }
 0x6f0   : > { %2112 = vrcp.f32 %v863_v28 }
 0x6f3   : > { %v866_v29 = vpop.xlane.xlu0 %865  ;;  %v869_v30 = vpop.xlane.xlu1 %868 }
 0x6f4   : > { %2114 = vrcp.f32 %v866_v29 }
 0x6f5   : > { %2116 = vrcp.f32 %v869_v30 }
 0x6f7   : > { %v879_v31 = vpop.permute.xlu0 %878  ;;  %v881_v32 = vpop.permute.xlu1 %880 }
 0x6f8   : > { %1943 = vmatprep.subr.bf16.mxu1 %v879_v31  ;;  %v890_v34 = vsel %vm717_vm5, %v881_v32, 0 }
 0x6f9   : > { %1944 = vmatpush3.bf16.msra.mxu1 %v879_v31 }
 0x6fa   : > { %2016 = vmatprep.subr.msk.bf16.mxu1 %vm717_vm5, %v881_v32  ;;  %v2113_v33 = vpop.eup %2112 }
 0x6fb   : > { %v961_v35 = vpop.permute.xlu1 %960  ;;  %v873_v40 = vmul.f32 %v2113_v33, %v2107_v22  ;;  %v957_v45 = vpop.permute.xlu0 %956 }
 0x6fc   : > { %v971_v46 = vsel %vm604_vm2, %v961_v35, 0 }
 0x6fd   : > { %1946 = vmatpush3.bf16.msra.mxu1 %v890_v34 }
 0x6fe   : > { %v2115_v37 = vpop.eup %2114  ;;  %2017 = vmatprep.subr.msk.bf16.mxu1 %vm604_vm2, %v961_v35 }
 0x6ff   : > { %v2117_v39 = vpop.eup %2116  ;;  %v874_v41 = vmul.f32 %v2115_v37, %v2109_v24  ;;  %v963_v47 = vpop.permute.xlu1 %962 }
 0x700   : > { %v875_v42 = vmul.f32 %v2117_v39, %v2111_v25  ;;  %v974_v48 = vsel %vm604_vm2, %v963_v47, 0 }
 0x701   : > { %v876_v43 = vpack.c.bf16 %v874_v41, %v873_v40 }
 0x702   : > { %v877_v44 = vpack.c.bf16 %v875_v42, %v875_v42 }
 0x703   : > { %1947 = vmatprep.mubr.msk.bf16.mxu1 %vm670_vm4, %v876_v43  ;;  %v959_v49 = vpop.permute.xlu1 %958 }
 0x704   : > { %1948 = vmatmul.mubr.msk.bf16.vlgmr.msra.gmra.mrb[4].mxu1 %vm670_vm4, %v877_v44 }
 0x705   : > { %1955 = vmatprep.mubr.msk.bf16.mxu1 %vm604_vm2, %v957_v45 }
 0x706   : > { %1952 = vmatpush3.bf16.xpose.msra.mxu1 %v971_v46 }
 0x707   : > { %2018 = vmatprep.subr.msk.bf16.mxu1 %vm604_vm2, %v963_v47 }
 0x70e   : > { %1954 = vmatpush3.bf16.xpose.msra.mxu1 %v974_v48 }
 0x715   : > { %1956 = vmatmul.mubr.msk.bf16.vlgmr.msra.gmra.mrb[8].mxu1 %vm604_vm2, %v959_v49 }
 0x7d7   : > { %v2453_v50 = vpop.f32.mrb[4].mxu1 }
 0x7d8   : > { %v2455_v51 = vpop.f32.mrb[5].mxu1 }
 0x7d9   : > { %v1950_v52 = vpop.f32.mrb[6].mxu1 }
 0x7da   : > { %v2457_v53 = vpop.f32.mrb[7].mxu1 }
 0x7e8   : > { %v1957_v54 = vpop.f32.mrb[8].mxu1 }
 0x7e9   : > { %v1010_v55 = vpop.f32.mrb[9].mxu1  ;;  %v1026_v60 = vsel %vm595_vm3, %v1957_v54, -1e+30 }
 0x7ea   : > { %v1024_v56 = vsel %vm595_vm3, %v1010_v55, -1e+30  ;;  %v1958_v57 = vpop.f32.mrb[10].mxu1  ;;  %v1033_v0 = vsel %vm670_vm4, %v1026_v60, -inf }
 0x7eb   : > { %v1013_v58 = vpop.f32.mrb[11].mxu1  ;;  %v1027_v59 = vsel %vm670_vm4, %v1024_v56, -inf }
 0x7ec   : > { %v1025_v62 = vsel %vm595_vm3, %v1013_v58, -1e+30  ;;  %1028 = vmax.xlane.f32.xlu0 %v1027_v59 }
 0x7ed   : > { %v1030_v63 = vsel %vm670_vm4, %v1025_v62, -inf }
 0x7ee   : > { %1031 = vmax.xlane.f32.xlu1 %v1030_v63 }
 0x7f0   : > { %1034 = vmax.xlane.f32.xlu0 %v1033_v0 }
 0x879   : > { %v1029_v2 = vpop.xlane.xlu0 %1028 }
 0x87a   : > { %v1036_v6 = vsub.f32 %v1024_v56, %v1029_v2 }
 0x87b   : > { %v1032_v7 = vpop.xlane.xlu1 %1031 }
 0x87c   : > { %v1039_v8 = vmul.f32 1.442695, %v1036_v6  ;;  %v1037_v10 = vsub.f32 %v1025_v62, %v1032_v7 }
 0x87d   : > { %v1035_v11 = vpop.xlane.xlu0 %1034 }
 0x87e   : > { %2118 = vpow2.f32 %v1039_v8  ;;  %v1041_v12 = vmul.f32 1.442695, %v1037_v10  ;;  %v1038_v13 = vsub.f32 %v1026_v60, %v1035_v11 }
 0x880   : > { %2120 = vpow2.f32 %v1041_v12  ;;  %v1043_v14 = vmul.f32 1.442695, %v1038_v13 }
 0x882   : > { %2122 = vpow2.f32 %v1043_v14 }
 0x888   : > { %v2119_v15 = vpop.eup %2118 }
 0x889   : > { %v1045_v16 = vsel %vm670_vm4, %v2119_v15, 0.0 }
 0x88a   : > { %v2121_v17 = vpop.eup %2120  ;;  %1046 = vadd.xlane.f32.xlu0 %v1045_v16 }
 0x88b   : > { %v1048_v20 = vsel %vm670_vm4, %v2121_v17, 0.0 }
 0x88c   : > { %v2123_v18 = vpop.eup %2122 }
 0x88d   : > { %v1051_v19 = vsel %vm670_vm4, %v2123_v18, 0.0 }
 0x88e   : > { %1052 = vadd.xlane.f32.xlu1 %v1051_v19  ;;  %1049 = vadd.xlane.f32.xlu0 %v1048_v20 }
 0x89f   : > { %1064 = vrot.lane.b32.xlu1 %v2377_v61, %s2202_s17 }
 0x8a3   : > { %1144 = vrot.lane.b32.xlu1 %v2380_v1, %s2203_s14 }
 0x8a4   : > { %1062 = vrot.lane.b32.xlu0 %v2380_v1, %s2202_s17 }
 0x8a7   : > { %1146 = vrot.lane.b32.xlu1 %v2377_v61, %s2203_s14 }
 0x8a8   : > { %1140 = vrot.lane.b32.xlu0 %v2380_v1, %s2204_s20 }
 0x8ab   : > { %1142 = vrot.lane.b32.xlu1 %v2377_v61, %s2204_s20 }
 0x917   : > { %v1047_v21 = vpop.xlane.xlu0 %1046 }
 0x918   : > { %2124 = vrcp.f32 %v1047_v21 }
 0x91b   : > { %v1050_v22 = vpop.xlane.xlu0 %1049  ;;  %v1053_v23 = vpop.xlane.xlu1 %1052 }
 0x91c   : > { %2126 = vrcp.f32 %v1050_v22 }
 0x91d   : > { %2128 = vrcp.f32 %v1053_v23 }
 0x91f   : > { %v1063_v24 = vpop.permute.xlu0 %1062  ;;  %v1065_v25 = vpop.permute.xlu1 %1064 }
 0x920   : > { %1959 = vmatprep.subr.bf16.mxu0 %v1063_v24  ;;  %v1074_v27 = vsel %vm717_vm5, %v1065_v25, 0 }
 0x921   : > { %1960 = vmatpush3.bf16.msra.mxu0 %v1063_v24 }
 0x922   : > { %2019 = vmatprep.subr.msk.bf16.mxu0 %vm717_vm5, %v1065_v25  ;;  %v2125_v26 = vpop.eup %2124 }
 0x923   : > { %v1145_v28 = vpop.permute.xlu1 %1144  ;;  %v1057_v31 = vmul.f32 %v2125_v26, %v2119_v15  ;;  %v1141_v37 = vpop.permute.xlu0 %1140 }
 0x924   : > { %v1155_v39 = vsel %vm604_vm2, %v1145_v28, 0 }
 0x925   : > { %1962 = vmatpush3.bf16.msra.mxu0 %v1074_v27 }
 0x926   : > { %v2127_v29 = vpop.eup %2126  ;;  %2020 = vmatprep.subr.msk.bf16.mxu0 %vm604_vm2, %v1145_v28 }
 0x927   : > { %v2129_v30 = vpop.eup %2128  ;;  %v1058_v32 = vmul.f32 %v2127_v29, %v2121_v17  ;;  %v1147_v40 = vpop.permute.xlu1 %1146 }
 0x928   : > { %v1059_v33 = vmul.f32 %v2129_v30, %v2123_v18  ;;  %v1158_v41 = vsel %vm604_vm2, %v1147_v40, 0 }
 0x929   : > { %v1060_v34 = vpack.c.bf16 %v1058_v32, %v1057_v31  ;;  %v2080_v31 = vld [vmem:[%s2312_s30] sm:$0xff]   ;;  %v2081_v32 = vld [vmem:[%s2312_s30 + $0x8] sm:$0xff]  }
 0x92a   : > { %v1061_v35 = vpack.c.bf16 %v1059_v33, %v1059_v33 }
 0x92b   : > { %1963 = vmatprep.mubr.msk.bf16.mxu0 %vm670_vm4, %v1060_v34  ;;  %v1143_v42 = vpop.permute.xlu1 %1142 }
 0x92c   : > { %1964 = vmatmul.mubr.msk.bf16.vlgmr.msra.gmra.mrb[12].mxu0 %vm670_vm4, %v1061_v35 }
 0x92d   : > { %1971 = vmatprep.mubr.msk.bf16.mxu0 %vm604_vm2, %v1141_v37 }
 0x92e   : > { %1968 = vmatpush3.bf16.xpose.msra.mxu0 %v1155_v39 }
 0x92f   : > { %2021 = vmatprep.subr.msk.bf16.mxu0 %vm604_vm2, %v1147_v40 }
 0x936   : > { %1970 = vmatpush3.bf16.xpose.msra.mxu0 %v1158_v41 }
 0x93d   : > { %1972 = vmatmul.mubr.msk.bf16.vlgmr.msra.gmra.mrb[16].mxu0 %vm604_vm2, %v1143_v42 }
 0x9ff   : > { %v1965_v43 = vpop.f32.mrb[12].mxu0 }
 0xa00   : > { %v1110_v44 = vpop.f32.mrb[13].mxu0 }
 0xa01   : > { %v1966_v45 = vpop.f32.mrb[14].mxu0 }
 0xa02   : > { %v1113_v46 = vpop.f32.mrb[15].mxu0 }
 0xa10   : > { %v1973_v47 = vpop.f32.mrb[16].mxu0 }
 0xa11   : > { %v1194_v48 = vpop.f32.mrb[17].mxu0  ;;  %v1210_v56 = vsel %vm595_vm3, %v1973_v47, -1e+30  ;;  %v1404_v47 = vsub.s32 2, %v2361_v36 }
 0xa12   : > { %v1208_v49 = vsel %vm595_vm3, %v1194_v48, -1e+30  ;;  %v1974_v52 = vpop.f32.mrb[18].mxu0  ;;  %v1217_v59 = vsel %vm670_vm4, %v1210_v56, -inf }
 0xa13   : > { %v1197_v54 = vpop.f32.mrb[19].mxu0  ;;  %v1211_v55 = vsel %vm670_vm4, %v1208_v49, -inf }
 0xa14   : > { %v1209_v57 = vsel %vm595_vm3, %v1197_v54, -1e+30  ;;  %1212 = vmax.xlane.f32.xlu0 %v1211_v55 }
 0xa15   : > { %v1214_v58 = vsel %vm670_vm4, %v1209_v57, -inf }
 0xa16   : > { %1215 = vmax.xlane.f32.xlu1 %v1214_v58 }
 0xa18   : > { %1218 = vmax.xlane.f32.xlu0 %v1217_v59 }
 0xaa1   : > { %v1213_v60 = vpop.xlane.xlu0 %1212 }
 0xaa2   : > { %v1220_v62 = vsub.f32 %v1208_v49, %v1213_v60  ;;  %v1405_v49 = vrot.slane %v2365_v38, %v1404_v47  ;;  %v1844_v47 = vld [vmem:[%s432_s22] ss:$0 sm:$0xff] }
 0xaa3   : > { %v1216_v63 = vpop.xlane.xlu1 %1215 }
 0xaa4   : > { %v1223_v0 = vmul.f32 1.442695, %v1220_v62  ;;  %v1221_v2 = vsub.f32 %v1209_v57, %v1216_v63 }
 0xaa5   : > { %v1219_v6 = vpop.xlane.xlu0 %1218 }
 0xaa6   : > { %2130 = vpow2.f32 %v1223_v0  ;;  %v1225_v7 = vmul.f32 1.442695, %v1221_v2  ;;  %v1222_v8 = vsub.f32 %v1210_v56, %v1219_v6 }
 0xaa8   : > { %2132 = vpow2.f32 %v1225_v7  ;;  %v1227_v10 = vmul.f32 1.442695, %v1222_v8 }
 0xaaa   : > { %2134 = vpow2.f32 %v1227_v10 }
 0xab0   : > { %v2131_v9 = vpop.eup %2130 }
 0xab1   : > { %v1229_v11 = vsel %vm670_vm4, %v2131_v9, 0.0 }
 0xab2   : > { %v2133_v12 = vpop.eup %2132  ;;  %1230 = vadd.xlane.f32.xlu0 %v1229_v11 }
 0xab3   : > { %v1232_v15 = vsel %vm670_vm4, %v2133_v12, 0.0 }
 0xab4   : > { %v2135_v13 = vpop.eup %2134 }
 0xab5   : > { %v1235_v14 = vsel %vm670_vm4, %v2135_v13, 0.0 }
 0xab6   : > { %1236 = vadd.xlane.f32.xlu1 %v1235_v14  ;;  %1233 = vadd.xlane.f32.xlu0 %v1232_v15 }
 0xac7   : > { %1248 = vrot.lane.b32.xlu1 %v2377_v61, %s2205_s23 }
 0xacb   : > { %943 = vrot.lane.b32.xlu1 %v2455_v51, %s2206_s26 }
 0xacc   : > { %1246 = vrot.lane.b32.xlu0 %v2380_v1, %s2205_s23 }
 0xacf   : > { %945 = vrot.lane.b32.xlu1 %v2457_v53, %s2206_s26 }
 0xad0   : > { %947 = vrot.lane.b32.xlu0 %v2453_v50, %s2206_s26 }
 0xad3   : > { %1127 = vrot.lane.b32.xlu1 %v1110_v44, %s2207_s0 }
 0xad4   : > { %1129 = vrot.lane.b32.xlu0 %v1113_v46, %s2207_s0 }
 0xad7   : > { %1131 = vrot.lane.b32.xlu1 %v1965_v43, %s2207_s0 }
 0xb3f   : > { %v1231_v16 = vpop.xlane.xlu0 %1230 }
 0xb40   : > { %2136 = vrcp.f32 %v1231_v16 }
 0xb43   : > { %v1234_v17 = vpop.xlane.xlu0 %1233  ;;  %v1237_v18 = vpop.xlane.xlu1 %1236 }
 0xb44   : > { %2138 = vrcp.f32 %v1234_v17 }
 0xb45   : > { %2140 = vrcp.f32 %v1237_v18  ;;  %v2082_v18 = vld [vmem:[%s2317_s19] sm:$0xff]  }
 0xb46   : > { %1991 = vmatprep.subr.bf16.mxu0 %v2082_v18 }
 0xb47   : > { %v1247_v61 = vpop.permute.xlu0 %1246  ;;  %v1249_v19 = vpop.permute.xlu1 %1248  ;;  %1992 = vmatpush3.bf16.msra.mxu0 %v2082_v18 }
 0xb48   : > { %1975 = vmatprep.subr.bf16.mxu1 %v1247_v61  ;;  %v1258_v53 = vsel %vm717_vm5, %v1249_v19, 0 }
 0xb49   : > { %1976 = vmatpush3.bf16.msra.mxu1 %v1247_v61  ;;  %v2083_v61 = vld [vmem:[%s2317_s19 + $0x8] sm:$0xff]  }
 0xb4a   : > { %2022 = vmatprep.subr.msk.bf16.mxu1 %vm717_vm5, %v1249_v19  ;;  %v2137_v50 = vpop.eup %2136  ;;  %1993 = vmatprep.subr.bf16.mxu0 %v2083_v61 }
 0xb4b   : > { %v948_v1 = vpop.permute.xlu0 %947  ;;  %v944_v51 = vpop.permute.xlu1 %943  ;;  %v1241_v24 = vmul.f32 %v2137_v50, %v2131_v9  ;;  %1994 = vmatpush3.bf16.msra.mxu0 %v2083_v61 }
 0xb4c   : > { %955 = vst.msk [vmem:[#allocation2 + $0x10] sm:$0xff] %vm952_vm6, %v948_v1  ;;  %953 = vst.msk [vmem:[#allocation2] sm:$0xff] %vm952_vm6, %v944_v51 }
 0xb4d   : > { %1978 = vmatpush3.bf16.msra.mxu1 %v1258_v53 }
 0xb4e   : > { %v2139_v20 = vpop.eup %2138  ;;  %1983 = vmatprep.subr.bf16.mxu1 %v2080_v31 }
 0xb4f   : > { %v2141_v21 = vpop.eup %2140  ;;  %v1130_v22 = vpop.permute.xlu0 %1129  ;;  %v1242_v25 = vmul.f32 %v2139_v20, %v2133_v12 }
 0xb50   : > { %v946_v23 = vpop.permute.xlu1 %945  ;;  %v1243_v26 = vmul.f32 %v2141_v21, %v2135_v13 }
 0xb51   : > { %954 = vst.msk [vmem:[#allocation2 + $0x8] sm:$0xff] %vm952_vm6, %v946_v23  ;;  %v1244_v27 = vpack.c.bf16 %v1242_v25, %v1241_v24  ;;  %v1450_v24 = vsub.s32 3, %v2361_v36 }
 0xb52   : > { %1138 = vst.msk [vmem:[#allocation2 + $0x8] sm:$0xff] %vm1136_vm7, %v1130_v22  ;;  %v1245_v28 = vpack.c.bf16 %v1243_v26, %v1243_v26  ;;  %v1457_v26 = vsub.s32 4, %v2361_v36 }
 0xb53   : > { %1979 = vmatprep.mubr.msk.bf16.mxu1 %vm670_vm4, %v1244_v27  ;;  %v1451_v25 = vrot.slane %v2365_v38, %v1450_v24 }
 0xb54   : > { %v1128_v29 = vpop.permute.xlu1 %1127  ;;  %1980 = vmatmul.mubr.msk.bf16.vlgmr.msra.gmra.mrb[12].mxu1 %vm670_vm4, %v1245_v28 }
 0xb55   : > { %1137 = vst.msk [vmem:[#allocation2] sm:$0xff] %vm1136_vm7, %v1128_v29  ;;  %1984 = vmatpush3.bf16.msra.mxu1 %v2080_v31 }
 0xb56   : > { %1985 = vmatprep.subr.bf16.mxu1 %v2081_v32 }
 0xb58   : > { %v1132_v30 = vpop.permute.xlu1 %1131 }
 0xb59   : > { %1139 = vst.msk [vmem:[#allocation2 + $0x10] sm:$0xff] %vm1136_vm7, %v1132_v30  ;;  %1986 = vmatpush3.bf16.msra.mxu1 %v2081_v32  ;;  %v1458_v32 = vrot.slane %v2365_v38, %v1457_v26  ;;  %v2085_v38 = vld [vmem:[%s2327_s25 + $0x8] sm:$0xff]  }
 0xc27   : > { %v1981_v33 = vpop.f32.mrb[12].mxu1 }
 0xc28   : > { %v1294_v34 = vpop.f32.mrb[13].mxu1 }
 0xc29   : > { %1311 = vrot.lane.b32.xlu0 %v1294_v34, %s2208_s1  ;;  %v1982_v35 = vpop.f32.mrb[14].mxu1 }
 0xc2a   : > { %v1297_v37 = vpop.f32.mrb[15].mxu1 }
 0xc2b   : > { %1313 = vrot.lane.b32.xlu1 %v1297_v37, %s2208_s1 }
 0xc2d   : > { %1315 = vrot.lane.b32.xlu0 %v1981_v33, %s2208_s1 }
 0xc9b   : > { %v1312_v39 = vpop.permute.xlu0 %1311 }
 0xc9c   : > { %1321 = vst.msk [vmem:[#allocation2] sm:$0xff] %vm1320_vm8, %v1312_v39 }
 0xc9d   : > { %v1314_v40 = vpop.permute.xlu1 %1313 }
 0xc9e   : > { %1322 = vst.msk [vmem:[#allocation2 + $0x8] sm:$0xff] %vm1320_vm8, %v1314_v40 }
 0xc9f   : > { %v1316_v41 = vpop.permute.xlu0 %1315 }
 0xca0   : > { %1323 = vst.msk [vmem:[#allocation2 + $0x10] sm:$0xff] %vm1320_vm8, %v1316_v41 }
 0xca3   : > { %v1324_v42 = vld [vmem:[#allocation2] sm:$0xff] }
 0xca5   : > { %v1325_v43 = vld [vmem:[#allocation2 + $0x8] sm:$0xff] }
 0xca6   : > { %v1327_v44 = vpack.c.bf16 %v1325_v43, %v1324_v42 }
 0xca7   : > { %v1326_v45 = vld [vmem:[#allocation2 + $0x10] sm:$0xff] }
 0xca8   : > { %1987 = vmatprep.mubr.msk.bf16.mxu1 %vm459_vm1, %v1327_v44  ;;  %v1328_v46 = vpack.c.bf16 %v1326_v45, %v1326_v45  ;;  %v2084_v44 = vld [vmem:[%s2327_s25] sm:$0xff]   ;;  %v2086_v45 = vld [vmem:[%s2327_s25 + $0x10] sm:$0xff]  }
 0xca9   : > { %1999 = vmatprep.subr.bf16.mxu1 %v2084_v44 }
 0xcaa   : > { %1988 = vmatmul.mubr.msk.bf16.vlgmr.msra.gmra.mrb[16].mxu1 %vm459_vm1, %v1328_v46  ;;  %v2087_v46 = vld [vmem:[%s2327_s25 + $0x18] sm:$0xff]  }
 0xcab   : > { %2000 = vmatpush3.bf16.msra.mxu1 %v2084_v44 }
 0xcac   : > { %2001 = vmatprep.subr.bf16.mxu1 %v2085_v38 }
 0xcaf   : > { %2002 = vmatpush3.bf16.msra.mxu1 %v2085_v38 }
 0xcb0   : > { %2003 = vmatprep.subr.bf16.mxu1 %v2086_v45 }
 0xcb3   : > { %2004 = vmatpush3.bf16.msra.mxu1 %v2086_v45 }
 0xcb4   : > { %2005 = vmatprep.subr.bf16.mxu1 %v2087_v46 }
 0xcb7   : > { %2006 = vmatpush3.bf16.msra.mxu1 %v2087_v46 }
 0xd7d   : > { %v1989_v48 = vpop.f32.mrb[16].mxu1 }
 0xd7e   : > { %v1385_v52 = vpop.f32.mrb[17].mxu1  ;;  %v1401_v57 = vadd.f32 %v1989_v48, %v2342_v4 }
 0xd7f   : > { %v1399_v54 = vadd.f32 %v1385_v52, %v2339_v3  ;;  %v1990_v55 = vpop.f32.mrb[18].mxu1 }
 0xd80   : > { %v1388_v56 = vpop.f32.mrb[19].mxu1  ;;  %v2529_v63 = vadd.f32 %v1405_v49, %v1401_v57 }
 0xd81   : > { %v2522_v58 = vadd.f32 %v1405_v49, %v1399_v54  ;;  %v1400_v59 = vadd.f32 %v1388_v56, %v2345_v5 }
 0xd82   : > { %v1415_v3 = vsel %vm459_vm1, %v2529_v63, 0.0 }
 0xd83   : > { %v2525_v60 = vadd.f32 %v1405_v49, %v1400_v59  ;;  %v1409_v62 = vsel %vm459_vm1, %v2522_v58, 0.0 }
 0xd84   : > { %1410 = vadd.xlane.f32.xlu1 %v1409_v62 }
 0xd85   : > { %v1412_v0 = vsel %vm459_vm1, %v2525_v60, 0.0 }
 0xd86   : > { %1413 = vadd.xlane.f32.xlu0 %v1412_v0 }
 0xd8a   : > { %1416 = vadd.xlane.f32.xlu0 %v1415_v3 }
 0xe11   : > { %v1411_v4 = vpop.xlane.xlu1 %1410 }
 0xe12   : > { %v1418_v2 = vmul.f32 0.03125, %v1411_v4 }
 0xe13   : > { %v1414_v6 = vpop.xlane.xlu0 %1413 }
 0xe14   : > { %v1421_v5 = vsub.f32 %v2522_v58, %v1418_v2  ;;  %v1419_v7 = vmul.f32 0.03125, %v1414_v6 }
 0xe16   : > { %v1422_v8 = vsub.f32 %v2525_v60, %v1419_v7  ;;  %v1424_v10 = vmul.f32 %v1421_v5, %v1421_v5 }
 0xe17   : > { %v1417_v9 = vpop.xlane.xlu0 %1416 }
 0xe18   : > { %v1420_v11 = vmul.f32 0.03125, %v1417_v9  ;;  %v1427_v12 = vsel %vm459_vm1, %v1424_v10, 0.0  ;;  %v1425_v13 = vmul.f32 %v1422_v8, %v1422_v8 }
 0xe19   : > { %1428 = vadd.xlane.f32.xlu0 %v1427_v12 }
 0xe1a   : > { %v1423_v14 = vsub.f32 %v2529_v63, %v1420_v11  ;;  %v1430_v15 = vsel %vm459_vm1, %v1425_v13, 0.0 }
 0xe1b   : > { %1431 = vadd.xlane.f32.xlu1 %v1430_v15 }
 0xe1c   : > { %v1426_v16 = vmul.f32 %v1423_v14, %v1423_v14 }
 0xe1e   : > { %v1433_v17 = vsel %vm459_vm1, %v1426_v16, 0.0  ;;  %v1650_v16 = vsub.s32 5, %v2361_v36 }
 0xe1f   : > { %1434 = vadd.xlane.f32.xlu0 %v1433_v17  ;;  %v2154_v17 = vld [vmem:[%s2298_s21] sm:$0xff] }
 0xe20   : > { %v1651_v18 = vrot.slane %v2154_v17, %v1650_v16 }
 0xea6   : > { %v1429_v19 = vpop.xlane.xlu0 %1428 }
 0xea7   : > { %v1436_v1 = vmul.f32 0.03125, %v1429_v19 }
 0xea8   : > { %v1432_v51 = vpop.xlane.xlu1 %1431 }
 0xea9   : > { %v1439_v50 = vadd.f32 1e-05, %v1436_v1  ;;  %v1437_v53 = vmul.f32 0.03125, %v1432_v51 }
 0xeab   : > { %2142 = vrsqrt.f32 %v1439_v50  ;;  %v1440_v20 = vadd.f32 1e-05, %v1437_v53 }
 0xeac   : > { %v1435_v21 = vpop.xlane.xlu0 %1434 }
 0xead   : > { %2144 = vrsqrt.f32 %v1440_v20  ;;  %v1438_v22 = vmul.f32 0.03125, %v1435_v21 }
 0xeaf   : > { %v1441_v23 = vadd.f32 1e-05, %v1438_v22 }
 0xeb1   : > { %2146 = vrsqrt.f32 %v1441_v23 }
 0xeb5   : > { %v2143_v27 = vpop.eup %2142 }
 0xeb6   : > { %v1445_v28 = vmul.f32 %v2143_v27, %v1421_v5 }
 0xeb7   : > { %v2145_v29 = vpop.eup %2144 }
 0xeb8   : > { %v1446_v30 = vmul.f32 %v2145_v29, %v1422_v8  ;;  %v1452_v31 = vmul.f32 %v1451_v25, %v1445_v28 }
 0xeba   : > { %v1453_v33 = vmul.f32 %v1451_v25, %v1446_v30  ;;  %v1459_v37 = vadd.f32 %v1458_v32, %v1452_v31 }
 0xebb   : > { %v2147_v34 = vpop.eup %2146 }
 0xebc   : > { %v1447_v35 = vmul.f32 %v2147_v34, %v1423_v14  ;;  %v1460_v39 = vadd.f32 %v1458_v32, %v1453_v33 }
 0xebe   : > { %v1454_v40 = vmul.f32 %v1451_v25, %v1447_v35  ;;  %v1462_v41 = vpack.c.bf16 %v1460_v39, %v1459_v37 }
 0xec0   : > { %1995 = vmatprep.mubr.msk.bf16.mxu0 %vm459_vm1, %v1462_v41  ;;  %v1461_v42 = vadd.f32 %v1458_v32, %v1454_v40 }
 0xec2   : > { %v1463_v43 = vpack.c.bf16 %v1461_v42, %v1461_v42 }
 0xec4   : > { %1996 = vmatmul.mubr.msk.bf16.vlgmr.msra.gmra.mrb[20].mxu0 %vm459_vm1, %v1463_v43 }
 0xf97   : > { %v1997_v48 = vpop.f32.mrb[20].mxu0 }
 0xf98   : > { %v1536_v49 = vadd.f32 %v1997_v48, %v1844_v47  ;;  %v1527_v52 = vpop.f32.mrb[21].mxu0 }
 0xf99   : > { %v1528_v54 = vadd.f32 %v1844_v47, %v1527_v52  ;;  %v1998_v55 = vpop.f32.mrb[22].mxu0 }
 0xf9a   : > { %v1546_v56 = vmul.f32 0.70710677, %v1536_v49  ;;  %v1530_v57 = vpop.f32.mrb[23].mxu0  ;;  %v1543_v7 = vmul.f32 0.5, %v1536_v49 }
 0xf9b   : > { %v1544_v59 = vmul.f32 0.70710677, %v1528_v54  ;;  %v1531_v62 = vadd.f32 %v1844_v47, %v1530_v57  ;;  %v1541_v8 = vmul.f32 0.5, %v1528_v54 }
 0xf9c   : > { %2148 = verf.f32 %v1546_v56 }
 0xf9d   : > { %2150 = verf.f32 %v1544_v59  ;;  %v1545_v0 = vmul.f32 0.70710677, %v1531_v62  ;;  %v1542_v10 = vmul.f32 0.5, %v1531_v62 }
 0xf9f   : > { %2152 = verf.f32 %v1545_v0 }
 0xfa6   : > { %v2149_v3 = vpop.eup %2148 }
 0xfa7   : > { %v2151_v4 = vpop.eup %2150  ;;  %v1552_v2 = vadd.f32 1.0, %v2149_v3 }
 0xfa8   : > { %v1550_v6 = vadd.f32 1.0, %v2151_v4 }
 0xfa9   : > { %v2153_v5 = vpop.eup %2152  ;;  %v1555_v11 = vmul.f32 %v1552_v2, %v1543_v7 }
 0xfaa   : > { %v1551_v9 = vadd.f32 1.0, %v2153_v5  ;;  %v1553_v12 = vmul.f32 %v1550_v6, %v1541_v8 }
 0xfab   : > { %v1557_v15 = vpack.c.bf16 %v1555_v11, %v1555_v11 }
 0xfac   : > { %v1554_v13 = vmul.f32 %v1551_v9, %v1542_v10 }
 0xfae   : > { %v1556_v14 = vpack.c.bf16 %v1554_v13, %v1553_v12 }
 0xfb0   : > { %2007 = vmatprep.mubr.msk.bf16.mxu1 %vm1590_vm9, %v1556_v14 }
 0xfb1   : > { %2008 = vmatmul.mubr.msk.bf16.vlgmr.msra.gmra.mrb[20].mxu1 %vm1590_vm9, %v1557_v15 }
0x1084   : > { %v2009_v61 = vpop.f32.mrb[20].mxu1 }
0x1085   : > { %v1647_v19 = vadd.f32 %v2009_v61, %v2529_v63  ;;  %v1631_v1 = vpop.f32.mrb[21].mxu1 }
0x1086   : > { %v1645_v51 = vadd.f32 %v1631_v1, %v2522_v58  ;;  %v2010_v50 = vpop.f32.mrb[22].mxu1 }
0x1087   : > { %v1654_v53 = vadd.f32 %v1651_v18, %v1647_v19  ;;  %v1634_v20 = vpop.f32.mrb[23].mxu1 }
0x1088   : > { %v1652_v21 = vadd.f32 %v1651_v18, %v1645_v51  ;;  %v1646_v22 = vadd.f32 %v1634_v20, %v2525_v60 }
0x1089   : > { %1657 = vst.msk [vmem:[%s2332_s10 + $0x10] sm:$0xff] %vm459_vm1, %v1654_v53 }
0x108a   : > { %1655 = vst.msk [vmem:[%s2332_s10] sm:$0xff] %vm459_vm1, %v1652_v21  ;;  %v1653_v23 = vadd.f32 %v1651_v18, %v1646_v22 }
0x108c   : > { %1656 = vst.msk [vmem:[%s2332_s10 + $0x8] sm:$0xff] %vm459_vm1, %v1653_v23 }
0x108d PF: > { %s18_s9 = sadd.s32 1, %s2193_s9   ;;  %s2602_s28 = sld [smem:[#allocation3_spill]] }
0x108e   : > { %p15_p8 = scmp.ge.s32.totalorder %s18_s9, 6   ;;  %s2603_s12 = sld [smem:[#allocation4_spill]] }
0x108f   : > { %s2604_s30 = sld [smem:[#allocation5_spill]]  ;;  %s2605_s27 = smov %s2185_s29 }
0x1090   :  { %17 = sbr.rel (!%p15_p8) target bundleno = 4 (0x4), region = 107 }
0x1094   : > { %s2606_s29 = smov %s2603_s12 }

</bundles_post_ra>
